<compile_context>
chip_gen: v5e
topology: v5e:2x2
jax: 0.10.0
libtpu: 0.0.40
codegen_flags: <defaults>
</compile_context>

<pallas_src>
import jax
import jax.numpy as jnp
from jax.experimental import pallas as pl
from jax.experimental.pallas import tpu as pltpu


# ------------------------------------------------------------------------------
# Static layout constants
# ------------------------------------------------------------------------------
N_PAD = 128            # lane-padded feature width (one full vreg lane tile)

# Row offsets inside the packed bf16 parameter slab.  All weight starts and
# bias rows are multiples of 16 (bf16 sublane-pair packing) so the static ref
# slices stay tile-aligned.
W1_R, B1_R = 0, 128    # W1 padded -> rows [0,128),   b1 -> row 128
W2_R, B2_R = 144, 272  # W2 padded -> rows [144,272), b2 -> row 272
WF_R, BF_R = 288, 416  # Wf padded -> rows [288,416), bf -> row 416
P_ROWS = 432           # total slab rows (multiple of 16)


# ------------------------------------------------------------------------------
# Kernel
# ------------------------------------------------------------------------------
def gnn_kernel(a_ref, x_ref, p_ref, o_ref):
    g, n, _ = a_ref.shape            # static block shape (G graphs per step)
    a = a_ref[...]                   # [G, N, N]    bf16 normalized adjacency
    x = x_ref[...]                   # [G, N, 128]  bf16 (features in lanes 0:10)

    # Static slices of the packed bf16 parameter slab (zero-padded to 128 lanes).
    w1 = p_ref[W1_R:W1_R + N_PAD, :]     # [128, 128]
    b1 = p_ref[B1_R:B1_R + 1, :]         # [1, 128]
    w2 = p_ref[W2_R:W2_R + N_PAD, :]
    b2 = p_ref[B2_R:B2_R + 1, :]
    wf = p_ref[WF_R:WF_R + N_PAD, :]
    bf = p_ref[BF_R:BF_R + 1, :]

    # --- GraphConv 1 (aggregate-first): h = relu((A @ X) @ W1 + b1) ---
    # Per-graph aggregation (batched MXU matmul), then one shared-weight matmul
    # on the flattened [G*N, 128] LHS to fill the MXU rows.
    ax = jnp.einsum('gij,gjf->gif', a, x, preferred_element_type=jnp.float32)
    ax = ax.reshape(g * n, N_PAD).astype(jnp.bfloat16)
    h = jnp.dot(ax, w1, preferred_element_type=jnp.float32) + b1   # f32 bias add
    h = jnp.maximum(h, 0.0).astype(jnp.bfloat16)                   # f32 ReLU -> bf16

    # --- GraphConv 2: h = relu((A @ h) @ W2 + b2) ---
    ah = jnp.einsum('gij,gjf->gif', a, h.reshape(g, n, N_PAD),
                    preferred_element_type=jnp.float32)
    ah = ah.reshape(g * n, N_PAD).astype(jnp.bfloat16)
    h = jnp.dot(ah, w2, preferred_element_type=jnp.float32) + b2
    h = jnp.maximum(h, 0.0).astype(jnp.bfloat16)

    # --- Final Linear: out = h @ Wf + bf  (lane-dense [G, N, 128] store) ---
    out = jnp.dot(h, wf, preferred_element_type=jnp.float32) + bf
    o_ref[...] = out.reshape(g, n, N_PAD).astype(o_ref.dtype)


# ------------------------------------------------------------------------------
# Wrapper
# ------------------------------------------------------------------------------
def _grid_steps_for_device(batch):
    """grid=(2,) on 2-TensorCore chips (v7x) when the batch splits evenly,
    otherwise grid=(1,) (whole batch in one step, optimal on v5e/v6e)."""
    try:
        kind = jax.devices()[0].device_kind.lower()
    except Exception:  # pragma: no cover - defensive
        kind = ""
    if batch % 2 == 0 and ("v7" in kind or "7x" in kind):
        return 2
    return 1


def gnn_forward(a_hat, x, param_slab):
    """Batched fused GNN forward.

    a_hat: [B, N, N] bf16, x: [B, N, F_in] f32, param_slab: [P_ROWS, 128] bf16.
    Returns the lane-dense padded output [B, N, 128] f32; real logits live in
    lanes [0:10] (slice in the consumer to avoid an extra HBM round-trip here).
    """
    B, N, _ = a_hat.shape
    f_in = x.shape[-1]

    steps = _grid_steps_for_device(B)
    G = B // steps                       # graphs per grid step

    # Lane-pad the node features to 128 columns and pre-cast to bf16 (halves
    # the X DMA and removes the per-step in-kernel cast).
    x_pad = jnp.zeros((B, N, N_PAD), jnp.bfloat16).at[:, :, :f_in].set(
        x.astype(jnp.bfloat16))

    flops = 2 * B * (2 * N * N * N_PAD) + 3 * 2 * B * N * N_PAD * N_PAD
    bytes_accessed = (a_hat.size * 2          # bf16 adjacency
                      + x_pad.size * 2        # bf16 padded features
                      + param_slab.size * 2   # bf16 param slab
                      + B * N * N_PAD * 4)    # f32 lane-dense output

    # NOTE: the constant-index param slab is only ~108 KiB in bf16, so the
    # default double buffer is negligible here; switch to a single buffer
    # (pipeline_mode=pl.Buffered(1)) only if N/B grow toward the VMEM limit.
    out_padded = pl.pallas_call(
        gnn_kernel,
        out_shape=jax.ShapeDtypeStruct((B, N, N_PAD), jnp.float32),
        grid_spec=pltpu.PrefetchScalarGridSpec(
            num_scalar_prefetch=0,
            grid=(steps,),
            in_specs=[
                pl.BlockSpec((G, N, N), lambda s: (s, 0, 0)),         # A_hat block
                pl.BlockSpec((G, N, N_PAD), lambda s: (s, 0, 0)),     # X block
                pl.BlockSpec((P_ROWS, N_PAD), lambda s: (0, 0)),      # params (resident)
            ],
            out_specs=pl.BlockSpec((G, N, N_PAD), lambda s: (s, 0, 0)),
        ),
        compiler_params=pltpu.CompilerParams(
            dimension_semantics=("parallel",)),                       # both v7x TCs
        cost_estimate=pl.CostEstimate(
            flops=flops, transcendentals=0, bytes_accessed=bytes_accessed),
    )(a_hat, x_pad, param_slab)

    return out_padded


# ------------------------------------------------------------------------------
# Parameter construction
# ------------------------------------------------------------------------------
def init_params(key):
    """Deterministic parameter init matching the module's layer shapes."""
    k1, k2, k3, k4, k5, k6 = jax.random.split(key, 6)
    w1 = jax.random.normal(k1, (10, 20), jnp.float32) / jnp.sqrt(10.0)
    b1 = jax.random.normal(k2, (20,), jnp.float32) * 0.01
    w2 = jax.random.normal(k3, (20, 30), jnp.float32) / jnp.sqrt(20.0)
    b2 = jax.random.normal(k4, (30,), jnp.float32) * 0.01
    wf = jax.random.normal(k5, (30, 10), jnp.float32) / jnp.sqrt(30.0)
    bf = jax.random.normal(k6, (10,), jnp.float32) * 0.01
    return (w1, b1, w2, b2, wf, bf)


def pack_params(params):
    """Pack the six small tensors into one zero-padded [P_ROWS, 128] bf16 slab.

    Padded lanes/rows must stay exactly zero so padded activations remain zero
    through bias + ReLU.
    """
    w1, b1, w2, b2, wf, bf = params
    slab = jnp.zeros((P_ROWS, N_PAD), jnp.float32)
    slab = slab.at[W1_R:W1_R + w1.shape[0], :w1.shape[1]].set(w1)
    slab = slab.at[B1_R, :b1.shape[0]].set(b1)
    slab = slab.at[W2_R:W2_R + w2.shape[0], :w2.shape[1]].set(w2)
    slab = slab.at[B2_R, :b2.shape[0]].set(b2)
    slab = slab.at[WF_R:WF_R + wf.shape[0], :wf.shape[1]].set(wf)
    slab = slab.at[BF_R, :bf.shape[0]].set(bf)
    return slab.astype(jnp.bfloat16)


def build_normalized_adjacency(key, batch, n):
    """Random undirected graphs -> D^-1/2 (A + I) D^-1/2, stored bf16, [B,N,N]."""
    raw = jax.random.bernoulli(key, p=0.15, shape=(batch, n, n)).astype(jnp.float32)
    a = jnp.maximum(raw, jnp.swapaxes(raw, -1, -2))          # symmetrize
    a = a + jnp.eye(n, dtype=jnp.float32)[None]              # self-loops
    deg = jnp.sum(a, axis=-1)
    d_inv_sqrt = 1.0 / jnp.sqrt(deg)
    a_hat = a * d_inv_sqrt[:, :, None] * d_inv_sqrt[:, None, :]
    return a_hat.astype(jnp.bfloat16)


# ------------------------------------------------------------------------------
# Driver
# ------------------------------------------------------------------------------
if __name__ == "__main__":
    key = jax.random.PRNGKey(0)
    k_x, k_adj, k_params = jax.random.split(key, 3)

    B = 8          # graphs in the batch
    N = 64         # nodes per graph
    F_IN = 10
    F_OUT = 10

    x = jax.random.normal(k_x, (B, N, F_IN), jnp.float32)      # node features
    a_hat = build_normalized_adjacency(k_adj, B, N)             # [B, N, N] bf16
    param_slab = pack_params(init_params(k_params))             # [432, 128] bf16

    out_padded = gnn_forward(a_hat, x, param_slab)
    out_padded = jax.block_until_ready(out_padded)

    # Consumer-side slice down to the real 10 output features (fused into the
    # consumer instead of being an extra HBM round-trip inside the forward).
    out = out_padded[:, :, :F_OUT]

    assert out_padded.shape == (B, N, N_PAD), out_padded.shape
    assert out.shape == (B, N, F_OUT), out.shape
    assert out.dtype == jnp.float32
    print("KERNEL_OK")
</pallas_src>

<mosaic_0001>
module attributes {stable_mosaic.version = 11 : i64} {
  func.func @gnn_kernel(%arg0: i32, %arg1: memref<8x64x64xbf16, #tpu.memory_space<vmem>>, %arg2: memref<8x64x128xbf16, #tpu.memory_space<vmem>>, %arg3: memref<432x128xbf16, #tpu.memory_space<vmem>>, %arg4: memref<8x64x128xf32, #tpu.memory_space<vmem>>) attributes {dimension_semantics = [#tpu.dimension_semantics<parallel>], iteration_bounds = array<i64: 1>, scalar_prefetch = 0 : i64, scratch_operands = 0 : i64, tpu.core_type = #tpu.core_type<tc>, window_params = [{transform_indices = @transform_0, window_bounds = array<i64: 8, 64, 64>}, {transform_indices = @transform_1, window_bounds = array<i64: 8, 64, 128>}, {pipeline_mode = #tpu.pipeline_mode<synchronous>, transform_indices = @transform_2, window_bounds = array<i64: 432, 128>}, {transform_indices = @transform_3, window_bounds = array<i64: 8, 64, 128>}]} {
    %c0 = arith.constant 0 : index
    %c0_0 = arith.constant 0 : index
    %c0_1 = arith.constant 0 : index
    %0 = vector.load %arg1[%c0, %c0_0, %c0_1] : memref<8x64x64xbf16, #tpu.memory_space<vmem>>, vector<8x64x64xbf16>
    %c0_2 = arith.constant 0 : index
    %c0_3 = arith.constant 0 : index
    %c0_4 = arith.constant 0 : index
    %1 = vector.load %arg2[%c0_2, %c0_3, %c0_4] : memref<8x64x128xbf16, #tpu.memory_space<vmem>>, vector<8x64x128xbf16>
    %c0_5 = arith.constant 0 : index
    %c0_6 = arith.constant 0 : index
    %2 = vector.load %arg3[%c0_5, %c0_6] : memref<432x128xbf16, #tpu.memory_space<vmem>>, vector<128x128xbf16>
    %c128 = arith.constant 128 : index
    %c0_7 = arith.constant 0 : index
    %3 = vector.load %arg3[%c128, %c0_7] : memref<432x128xbf16, #tpu.memory_space<vmem>>, vector<1x128xbf16>
    %c144 = arith.constant 144 : index
    %c0_8 = arith.constant 0 : index
    %4 = vector.load %arg3[%c144, %c0_8] : memref<432x128xbf16, #tpu.memory_space<vmem>>, vector<128x128xbf16>
    %c272 = arith.constant 272 : index
    %c0_9 = arith.constant 0 : index
    %5 = vector.load %arg3[%c272, %c0_9] : memref<432x128xbf16, #tpu.memory_space<vmem>>, vector<1x128xbf16>
    %c288 = arith.constant 288 : index
    %c0_10 = arith.constant 0 : index
    %6 = vector.load %arg3[%c288, %c0_10] : memref<432x128xbf16, #tpu.memory_space<vmem>>, vector<128x128xbf16>
    %c416 = arith.constant 416 : index
    %c0_11 = arith.constant 0 : index
    %7 = vector.load %arg3[%c416, %c0_11] : memref<432x128xbf16, #tpu.memory_space<vmem>>, vector<1x128xbf16>
    "tpu.trace_start"() <{level = 10 : i32, message = "gij,gjf->gif"}> : () -> ()
    %cst = arith.constant dense<0.000000e+00> : vector<8x64x128xf32>
    %8 = tpu.matmul %0, %1, %cst {dimension_numbers = #tpu.dot_dimension_numbers<[2], [1], [1], [2], [0, 0, 0, 1, 1, 2], [0], [0]>} : vector<8x64x64xbf16>, vector<8x64x128xbf16>, vector<8x64x128xf32> -> vector<8x64x128xf32>
    "tpu.trace_stop"() : () -> ()
    %9 = vector.shape_cast %8 : vector<8x64x128xf32> to vector<512x128xf32>
    %10 = arith.truncf %9 : vector<512x128xf32> to vector<512x128xbf16>
    %cst_12 = arith.constant dense<0.000000e+00> : vector<512x128xf32>
    %11 = tpu.matmul %10, %2, %cst_12 {dimension_numbers = #tpu.dot_dimension_numbers<[1], [0], [0], [1], [0, 0, 1, 1], [], []>} : vector<512x128xbf16>, vector<128x128xbf16>, vector<512x128xf32> -> vector<512x128xf32>
    %12 = arith.extf %3 : vector<1x128xbf16> to vector<1x128xf32>
    %13 = vector.broadcast %12 : vector<1x128xf32> to vector<512x128xf32>
    %14 = arith.addf %11, %13 : vector<512x128xf32>
    %cst_13 = arith.constant 0.000000e+00 : f32
    %15 = vector.broadcast %cst_13 : f32 to vector<512x128xf32>
    %16 = arith.maximumf %14, %15 : vector<512x128xf32>
    %17 = arith.truncf %16 : vector<512x128xf32> to vector<512x128xbf16>
    %18 = vector.shape_cast %17 : vector<512x128xbf16> to vector<8x64x128xbf16>
    "tpu.trace_start"() <{level = 10 : i32, message = "gij,gjf->gif"}> : () -> ()
    %cst_14 = arith.constant dense<0.000000e+00> : vector<8x64x128xf32>
    %19 = tpu.matmul %0, %18, %cst_14 {dimension_numbers = #tpu.dot_dimension_numbers<[2], [1], [1], [2], [0, 0, 0, 1, 1, 2], [0], [0]>} : vector<8x64x64xbf16>, vector<8x64x128xbf16>, vector<8x64x128xf32> -> vector<8x64x128xf32>
    "tpu.trace_stop"() : () -> ()
    %20 = vector.shape_cast %19 : vector<8x64x128xf32> to vector<512x128xf32>
    %21 = arith.truncf %20 : vector<512x128xf32> to vector<512x128xbf16>
    %cst_15 = arith.constant dense<0.000000e+00> : vector<512x128xf32>
    %22 = tpu.matmul %21, %4, %cst_15 {dimension_numbers = #tpu.dot_dimension_numbers<[1], [0], [0], [1], [0, 0, 1, 1], [], []>} : vector<512x128xbf16>, vector<128x128xbf16>, vector<512x128xf32> -> vector<512x128xf32>
    %23 = arith.extf %5 : vector<1x128xbf16> to vector<1x128xf32>
    %24 = vector.broadcast %23 : vector<1x128xf32> to vector<512x128xf32>
    %25 = arith.addf %22, %24 : vector<512x128xf32>
    %cst_16 = arith.constant 0.000000e+00 : f32
    %26 = vector.broadcast %cst_16 : f32 to vector<512x128xf32>
    %27 = arith.maximumf %25, %26 : vector<512x128xf32>
    %28 = arith.truncf %27 : vector<512x128xf32> to vector<512x128xbf16>
    %cst_17 = arith.constant dense<0.000000e+00> : vector<512x128xf32>
    %29 = tpu.matmul %28, %6, %cst_17 {dimension_numbers = #tpu.dot_dimension_numbers<[1], [0], [0], [1], [0, 0, 1, 1], [], []>} : vector<512x128xbf16>, vector<128x128xbf16>, vector<512x128xf32> -> vector<512x128xf32>
    %30 = arith.extf %7 : vector<1x128xbf16> to vector<1x128xf32>
    %31 = vector.broadcast %30 : vector<1x128xf32> to vector<512x128xf32>
    %32 = arith.addf %29, %31 : vector<512x128xf32>
    %33 = vector.shape_cast %32 : vector<512x128xf32> to vector<8x64x128xf32>
    %c0_18 = arith.constant 0 : index
    %c0_19 = arith.constant 0 : index
    %c0_20 = arith.constant 0 : index
    %34 = vector.load %arg4[%c0_18, %c0_19, %c0_20] : memref<8x64x128xf32, #tpu.memory_space<vmem>>, vector<8x64x128xf32>
    tpu.vector_store %arg4[%c0_18, %c0_19, %c0_20], %33 {strides = array<i32>} : memref<8x64x128xf32, #tpu.memory_space<vmem>>, vector<8x64x128xf32>,
    return
  }
  func.func @transform_0(%arg0: i32) -> (i32, i32, i32) {
    %c0_i32 = arith.constant 0 : i32
    %c0_i32_0 = arith.constant 0 : i32
    %c0_i32_1 = arith.constant 0 : i32
    return %arg0, %c0_i32, %c0_i32_0 : i32, i32, i32
  }
  func.func @transform_1(%arg0: i32) -> (i32, i32, i32) {
    %c0_i32 = arith.constant 0 : i32
    %c0_i32_0 = arith.constant 0 : i32
    %c0_i32_1 = arith.constant 0 : i32
    return %arg0, %c0_i32, %c0_i32_0 : i32, i32, i32
  }
  func.func @transform_2(%arg0: i32) -> (i32, i32) {
    %c0_i32 = arith.constant 0 : i32
    %c0_i32_0 = arith.constant 0 : i32
    %c0_i32_1 = arith.constant 0 : i32
    return %c0_i32, %c0_i32_0 : i32, i32
  }
  func.func @transform_3(%arg0: i32) -> (i32, i32, i32) {
    %c0_i32 = arith.constant 0 : i32
    %c0_i32_0 = arith.constant 0 : i32
    %c0_i32_1 = arith.constant 0 : i32
    return %arg0, %c0_i32, %c0_i32_0 : i32, i32, i32
  }
}

</mosaic_0001>

<bundles_post_ra>
// kernel: tpu_custom_call.1
= control target key start
LH: loop header
LB: loop body
LE: loop exit
PB: predicated region body
PF: predicated region fallthrough
CT: control target
= control target key end

     0   :  { %8 = vsyncpa [#allocation3], 0  ;;  %s3648_s0 = inlined_call_operand.hbm [shape: bf16[8,64,64], index: 0, kind: input, shape index: {}]   ;;  %s3649_s1 = inlined_call_operand.hbm [shape: bf16[8,64,128], index: 1, kind: input, shape index: {}]   ;;  %s3650_s2 = inlined_call_operand.hbm [shape: bf16[432,128], index: 2, kind: input, shape index: {}]   ;;  %s3651_s3 = inlined_call_operand.hbm [shape: f32[8,64,128], index: 3, kind: output, shape index: {}]  }
   0x1   :  { %9 = vsyncpa [#allocation6], 0 }
   0x2   :  { %10 = vsyncpa [#allocation4], 0  ;;  %s28_s14 = sshll.u32 %s3649_s1, 4  ;;  %s3006_s15 = smov [#allocation5]   ;;  %s29_s14 = int_to_ptr.hbm [resolvable:$true] %s28_s14 }
   0x3   :  { %s30_s16 = sshll.u32 %s3006_s15, 4  ;;  %s15_s19 = sshll.u32 %s3648_s0, 4  ;;  %s31_s16 = int_to_ptr.vmem [resolvable:$true] %s30_s16  ;;  %s16_s19 = int_to_ptr.hbm [resolvable:$true] %s15_s19 }
   0x4   :  { %s3007_s20 = smov 64   ;;  %s3008_s21 = smov 4  }
   0x5   :  { %36 = dma.hbm_to_vmem [thread:$0]  %s29_s14, 4096, %s31_s16, [#allocation6], %s3007_s20, %s3007_s20, %s3008_s21  }
   0x6   :  { %s3009_s22 = smov [#allocation2]   ;;  %s41_s26 = sshll.u32 %s3650_s2, 4  ;;  %s42_s26 = int_to_ptr.hbm [resolvable:$true] %s41_s26 }
   0x7   :  { %s17_s23 = sshll.u32 %s3009_s22, 4  ;;  %s3010_s1 = smov [#allocation7]   ;;  %s18_s23 = int_to_ptr.vmem [resolvable:$true] %s17_s23 }
   0x8   :  { %23 = dma.hbm_to_vmem [thread:$0]  %s16_s19, 4096, %s18_s23, [#allocation3], %s3007_s20, %s3007_s20, %s3008_s21  }
   0x9   :  { %s43_s27 = sshll.u32 %s3010_s1, 4  ;;  %s44_s27 = int_to_ptr.vmem [resolvable:$true] %s43_s27 }
   0xa   :  { %49 = dma.hbm_to_vmem [thread:$0]  %s42_s26, 3456, %s44_s27, [#allocation6], %s3007_s20, %s3007_s20, %s3008_s21  }
   0xb   :  { %3000 = dma.done.wait [#allocation3], 4096  }
   0xc   :  { %3001 = vsyncadd [#allocation3], 4294963200 }
   0xd   :  { %3002 = dma.done.wait [#allocation6], 7552  }
   0xe   :  { %3003 = vsyncadd [#allocation6], 4294959744  ;;  %v2827_v0 = vld [vmem:[#allocation5 + $0x18] sm:$0xff]  ;;  %v2826_v1 = vld [vmem:[#allocation5 + $0x10] sm:$0xff]  ;;  %vm286_vm0 = vcmask 523264   ;;  %s3011_s0 = smov [#allocation8]  }
   0xf   :  { %303 = vmatpush.bf16.msra.mxu0 %v2827_v0  ;;  %v2825_v2 = vld [vmem:[#allocation5 + $0x8] sm:$0xff]  ;;  %v2824_v3 = vld [vmem:[#allocation5] sm:$0xff]  ;;  %v2831_v5 = vld [vmem:[#allocation5 + $0x38] sm:$0xff]  ;;  %s2360_s2 = sshll.u32 %s3011_s0, 4  ;;  %s2362_s30 = sshll.u32 %s3651_s3, 4  ;;  %s2361_s2 = int_to_ptr.vmem [resolvable:$true] %s2360_s2  ;;  %s2363_s30 = int_to_ptr.hbm [resolvable:$true] %s2362_s30 }
  0x10   :  { %v3043_v4 = vld [vmem:[#allocation2] sm:$0xff]  ;;  %388 = vmatpush.bf16.msra.mxu1 %v2831_v5  ;;  %v2830_v6 = vld [vmem:[#allocation5 + $0x30] sm:$0xff]  ;;  %v3047_v7 = vld [vmem:[#allocation2 + $0x8] sm:$0xff]  ;;  %s3012_s4 = smov 128   ;;  %s3013_s5 = smov 8  }
  0x11   :  { %v2829_v8 = vld [vmem:[#allocation5 + $0x28] sm:$0xff]  ;;  %v2843_v9 = vld [vmem:[#allocation5 + $0x98] sm:$0xff]  ;;  %v2828_v10 = vld [vmem:[#allocation5 + $0x20] sm:$0xff] }
  0x12   :  { %v2842_v11 = vld [vmem:[#allocation5 + $0x90] sm:$0xff]  ;;  %v3051_v12 = vld [vmem:[#allocation2 + $0x20] sm:$0xff]  ;;  %v2841_v13 = vld [vmem:[#allocation5 + $0x88] sm:$0xff] }
  0x13   :  { %304 = vmatpush.bf16.msra.mxu0 %v2826_v1  ;;  %v2840_v14 = vld [vmem:[#allocation5 + $0x80] sm:$0xff]  ;;  %v3055_v15 = vld [vmem:[#allocation2 + $0x10] sm:$0xff]  ;;  %v3059_v16 = vld [vmem:[#allocation2 + $0x28] sm:$0xff] }
  0x14   :  { %389 = vmatpush.bf16.msra.mxu1 %v2830_v6  ;;  %v3063_v17 = vld [vmem:[#allocation2 + $0x18] sm:$0xff]  ;;  %v3067_v18 = vld [vmem:[#allocation2 + $0x30] sm:$0xff]  ;;  %v3071_v19 = vld [vmem:[#allocation2 + $0x80] sm:$0xff] }
  0x15   :  { %v2835_v20 = vld [vmem:[#allocation5 + $0x58] sm:$0xff]  ;;  %v2834_v22 = vld [vmem:[#allocation5 + $0x50] sm:$0xff]  ;;  %v2833_v25 = vld [vmem:[#allocation5 + $0x48] sm:$0xff] }
  0x16   :  { %v2863_v21 = vld [vmem:[#allocation7 + $0x38] sm:$0xff]  ;;  %473 = vmatpush.bf16.msra.mxu2 %v2835_v20  ;;  %v2862_v23 = vld [vmem:[#allocation7 + $0x30] sm:$0xff]  ;;  %v2832_v26 = vld [vmem:[#allocation5 + $0x40] sm:$0xff] }
  0x17   :  { %305 = vmatpush.bf16.msra.mxu0 %v2825_v2  ;;  %v3075_v24 = vld [vmem:[#allocation2 + $0x38] sm:$0xff]  ;;  %v3079_v27 = vld [vmem:[#allocation2 + $0x88] sm:$0xff]  ;;  %v3083_v29 = vld [vmem:[#allocation2 + $0x40] sm:$0xff] }
  0x18   :  { %390 = vmatpush.bf16.msra.mxu1 %v2829_v8  ;;  %v2861_v28 = vld [vmem:[#allocation7 + $0x28] sm:$0xff]  ;;  %v2860_v30 = vld [vmem:[#allocation7 + $0x20] sm:$0xff]  ;;  %v2859_v31 = vld [vmem:[#allocation7 + $0x18] sm:$0xff] }
  0x19   :  { %v2858_v32 = vld [vmem:[#allocation7 + $0x10] sm:$0xff]  ;;  %v2857_v34 = vld [vmem:[#allocation7 + $0x8] sm:$0xff]  ;;  %v2856_v36 = vld [vmem:[#allocation7] sm:$0xff] }
  0x1a   :  { %474 = vmatpush.bf16.msra.mxu2 %v2834_v22  ;;  %v3087_v33 = vld [vmem:[#allocation2 + $0x90] sm:$0xff]  ;;  %v3089_v35 = vld [vmem:[#allocation2 + $0x48] sm:$0xff]  ;;  %v3095_v37 = vld [vmem:[#allocation2 + $0x98] sm:$0xff] }
  0x1b   :  { %306 = vmatpush.bf16.msra.mxu0 %v2824_v3  ;;  %v3097_v38 = vld [vmem:[#allocation2 + $0x50] sm:$0xff]  ;;  %v2839_v40 = vld [vmem:[#allocation5 + $0x78] sm:$0xff]  ;;  %v2837_v45 = vld [vmem:[#allocation5 + $0x68] sm:$0xff] }
  0x1c   :  { %391 = vmatpush.bf16.msra.mxu1 %v2828_v10  ;;  %v3103_v41 = vld [vmem:[#allocation2 + $0x58] sm:$0xff]  ;;  %558 = vmatpush.bf16.msra.mxu3 %v2839_v40  ;;  %v2838_v43 = vld [vmem:[#allocation5 + $0x70] sm:$0xff]  ;;  %v2836_v47 = vld [vmem:[#allocation5 + $0x60] sm:$0xff] }
  0x1d   :  { %v3107_v48 = vld [vmem:[#allocation2 + $0x60] sm:$0xff]  ;;  %v3111_v52 = vld [vmem:[#allocation2 + $0x68] sm:$0xff]  ;;  %v3115_v57 = vld [vmem:[#allocation2 + $0x70] sm:$0xff] }
  0x1e   :  { %2408 = vmatmul.msk.bf16.vlgmr.msra.gmra.mxu0 %vm286_vm0, %v3043_v4  ;;  %475 = vmatpush.bf16.msra.mxu2 %v2833_v25  ;;  %v3121_v62 = vld [vmem:[#allocation2 + $0x78] sm:$0xff]  ;;  %v2845_v40 = vld [vmem:[#allocation5 + $0xa8] sm:$0xff] }
  0x1f   :  { %643 = vmatpush.bf16.msrb.mxu0 %v2843_v9  ;;  %2444 = vmatmul.msk.bf16.vlgmr.msra.gmra.mxu1 %vm286_vm0, %v3051_v12 }
  0x20   :  { %559 = vmatpush.bf16.msra.mxu3 %v2838_v43 }
  0x22   :  { %476 = vmatpush.bf16.msra.mxu2 %v2832_v26 }
  0x23   :  { %644 = vmatpush.bf16.msrb.mxu0 %v2842_v11 }
  0x24   :  { %560 = vmatpush.bf16.msra.mxu3 %v2837_v45 }
  0x25   :  { %2480 = vmatmul.msk.bf16.vlgmr.msra.gmra.mxu2 %vm286_vm0, %v3083_v29 }
  0x27   :  { %645 = vmatpush.bf16.msrb.mxu0 %v2841_v13 }
  0x28   :  { %561 = vmatpush.bf16.msra.mxu3 %v2836_v47 }
  0x2b   :  { %646 = vmatpush.bf16.msrb.mxu0 %v2840_v14  ;;  %2516 = vmatmul.msk.bf16.vlgmr.msra.gmra.mxu3 %vm286_vm0, %v3107_v48 }
  0x2e   :  { %2409 = vmatmul.msk.bf16.gmra.mxu0 %vm286_vm0, %v3047_v7 }
  0x2f   :  { %2445 = vmatmul.msk.bf16.gmra.mxu1 %vm286_vm0, %v3059_v16  ;;  %1005 = vmatpush.bf16.msra.mxu0 %v2863_v21 }
  0x33   :  { %1006 = vmatpush.bf16.msra.mxu0 %v2862_v23 }
  0x35   :  { %2481 = vmatmul.msk.bf16.gmra.mxu2 %vm286_vm0, %v3089_v35 }
  0x37   :  { %1007 = vmatpush.bf16.msra.mxu0 %v2861_v28 }
  0x3b   :  { %1008 = vmatpush.bf16.msra.mxu0 %v2860_v30  ;;  %2517 = vmatmul.msk.bf16.gmra.mxu3 %vm286_vm0, %v3111_v52 }
  0x3e   :  { %2410 = vmatmul.msk.bf16.gmra.mxu0 %vm286_vm0, %v3055_v15 }
  0x3f   :  { %2446 = vmatmul.msk.bf16.gmra.mxu1 %vm286_vm0, %v3067_v18  ;;  %1009 = vmatpush.bf16.msra.mxu0 %v2859_v31 }
  0x43   :  { %1010 = vmatpush.bf16.msra.mxu0 %v2858_v32  ;;  %v2847_v32 = vld [vmem:[#allocation5 + $0xb8] sm:$0xff] }
  0x44   :  { %728 = vmatpush.bf16.msrb.mxu1 %v2847_v32 }
  0x45   :  { %2482 = vmatmul.msk.bf16.gmra.mxu2 %vm286_vm0, %v3097_v38 }
  0x47   :  { %1011 = vmatpush.bf16.msra.mxu0 %v2857_v34 }
  0x4b   :  { %1012 = vmatpush.bf16.msra.mxu0 %v2856_v36  ;;  %2518 = vmatmul.msk.bf16.gmra.mxu3 %vm286_vm0, %v3115_v57  ;;  %v2846_v36 = vld [vmem:[#allocation5 + $0xb0] sm:$0xff] }
  0x4c   :  { %729 = vmatpush.bf16.msrb.mxu1 %v2846_v36 }
  0x4e   :  { %2411 = vmatmul.msk.bf16.gmra.mxu0 %vm286_vm0, %v3063_v17 }
  0x4f   :  { %2447 = vmatmul.msk.bf16.gmra.mxu1 %vm286_vm0, %v3075_v24 }
  0x50   :  { %730 = vmatpush.bf16.msrb.mxu1 %v2845_v40 }
  0x55   :  { %2483 = vmatmul.msk.bf16.gmra.mxu2 %vm286_vm0, %v3103_v41 }
  0x5b   :  { %2519 = vmatmul.msk.bf16.gmra.mxu3 %vm286_vm0, %v3121_v62 }
  0x5e   :  { %2552 = vmatmul.msk.bf16.vlgmr.msrb.gmra.mxu0 %vm286_vm0, %v3071_v19 }
  0x6e   :  { %2553 = vmatmul.msk.bf16.gmra.mxu0 %vm286_vm0, %v3079_v27 }
  0x7e   :  { %2554 = vmatmul.msk.bf16.gmra.mxu0 %vm286_vm0, %v3087_v33 }
  0x8e   :  { %2555 = vmatmul.msk.bf16.gmra.mxu0 %vm286_vm0, %v3095_v37 }
  0x9b   :  { %v308_v39 = vpop.f32.mrf.mxu0 }
  0x9c   :  { %v393_v56 = vpop.f32.mrf.mxu1 }
  0xa3   :  { %v310_v42 = vpop.f32.mrf.mxu0 }
  0xa4   :  { %v923_v44 = vpack.c.bf16 %v310_v42, %v308_v39  ;;  %v395_v60 = vpop.f32.mrf.mxu1  ;;  %v2844_v42 = vld [vmem:[#allocation5 + $0xa0] sm:$0xff] }
  0xa5   :  { %v927_v1 = vpack.c.bf16 %v395_v60, %v393_v56  ;;  %731 = vmatpush.bf16.msrb.mxu1 %v2844_v42 }
  0xa6   :  { %1013 = vmatmul.bf16.vlgmr.msra.gmra.mxu0 %v923_v44 }
  0xa8   :  { %v478_v20 = vpop.f32.mrf.mxu2 }
  0xab   :  { %v313_v46 = vpop.f32.mrf.mxu0 }
  0xac   :  { %v398_v63 = vpop.f32.mrf.mxu1 }
  0xae   :  { %v563_v56 = vpop.f32.mrf.mxu3 }
  0xb0   :  { %v480_v25 = vpop.f32.mrf.mxu2 }
  0xb1   :  { %v931_v31 = vpack.c.bf16 %v480_v25, %v478_v20 }
  0xb3   :  { %v315_v49 = vpop.f32.mrf.mxu0 }
  0xb4   :  { %v924_v50 = vpack.c.bf16 %v315_v49, %v313_v46  ;;  %v400_v2 = vpop.f32.mrf.mxu1  ;;  %v3139_v46 = vld [vmem:[#allocation2 + $0xa0] sm:$0xff] }
  0xb5   :  { %v928_v8 = vpack.c.bf16 %v400_v2, %v398_v63  ;;  %2588 = vmatmul.msk.bf16.vlgmr.msrb.gmra.mxu1 %vm286_vm0, %v3139_v46 }
  0xb6   :  { %1018 = vmatmul.bf16.gmra.mxu0 %v924_v50 }
  0xb8   :  { %v483_v28 = vpop.f32.mrf.mxu2 }
  0xbb   :  { %v318_v51 = vpop.f32.mrf.mxu0 }
  0xbc   :  { %v403_v5 = vpop.f32.mrf.mxu1 }
  0xc0   :  { %v485_v34 = vpop.f32.mrf.mxu2 }
  0xc1   :  { %v932_v45 = vpack.c.bf16 %v485_v34, %v483_v28 }
  0xc3   :  { %v320_v53 = vpop.f32.mrf.mxu0 }
  0xc4   :  { %v925_v54 = vpack.c.bf16 %v320_v53, %v318_v51  ;;  %v405_v9 = vpop.f32.mrf.mxu1  ;;  %v3143_v53 = vld [vmem:[#allocation2 + $0xa8] sm:$0xff] }
  0xc5   :  { %v929_v11 = vpack.c.bf16 %v405_v9, %v403_v5  ;;  %2589 = vmatmul.msk.bf16.gmra.mxu1 %vm286_vm0, %v3143_v53  ;;  %v3149_v5 = vld [vmem:[#allocation2 + $0xb0] sm:$0xff] }
  0xc6   :  { %1023 = vmatmul.bf16.gmra.mxu0 %v925_v54 }
  0xc8   :  { %v488_v43 = vpop.f32.mrf.mxu2 }
  0xcb   :  { %v323_v55 = vpop.f32.mrf.mxu0 }
  0xcc   :  { %v408_v13 = vpop.f32.mrf.mxu1 }
  0xd0   :  { %v490_v49 = vpop.f32.mrf.mxu2 }
  0xd1   :  { %v933_v51 = vpack.c.bf16 %v490_v49, %v488_v43  ;;  %v2851_v43 = vld [vmem:[#allocation5 + $0xd8] sm:$0xff] }
  0xd2   :  { %813 = vmatpush.bf16.msrb.mxu2 %v2851_v43 }
  0xd3   :  { %v325_v58 = vpop.f32.mrf.mxu0 }
  0xd4   :  { %v926_v59 = vpack.c.bf16 %v325_v58, %v323_v55  ;;  %v410_v21 = vpop.f32.mrf.mxu1  ;;  %v207_v58 = vld [vmem:[#allocation7 + $0x40] sm:$0x1] }
  0xd5   :  { %v930_v23 = vpack.c.bf16 %v410_v21, %v408_v13  ;;  %2590 = vmatmul.msk.bf16.gmra.mxu1 %vm286_vm0, %v3149_v5 }
  0xd6   :  { %1028 = vmatmul.bf16.gmra.mxu0 %v926_v59  ;;  %v955_v59 = vunpack.c.l.bf16 %v207_v58 }
  0xd8   :  { %v493_v54 = vpop.f32.mrf.mxu2 }
  0xdb   :  { %v3119_v61 = vpop.f32.mrf.mxu0 }
  0xe0   :  { %v495_v60 = vpop.f32.mrf.mxu2 }
  0xe1   :  { %v934_v2 = vpack.c.bf16 %v495_v60, %v493_v54 }
  0xe3   :  { %v3125_v0 = vpop.f32.mrf.mxu0 }
  0xe6   :  { %1033 = vmatmul.bf16.gmra.mxu0 %v927_v1  ;;  %v3147_v1 = vperm.slane %v955_v59, 0 }
  0xeb   :  { %v3127_v3 = vpop.f32.mrf.mxu0 }
  0xf3   :  { %v3129_v6 = vpop.f32.mrf.mxu0 }
  0xf6   :  { %1038 = vmatmul.bf16.gmra.mxu0 %v928_v8  ;;  %v565_v8 = vpop.f32.mrf.mxu3 }
  0xfb   :  { %v3131_v10 = vpop.f32.mrf.mxu0 }
  0xfe   :  { %v568_v42 = vpop.f32.mrf.mxu3 }
 0x103   :  { %v3133_v14 = vpop.f32.mrf.mxu0 }
 0x106   :  { %1043 = vmatmul.bf16.gmra.mxu0 %v929_v11 }
 0x10b   :  { %v3135_v22 = vpop.f32.mrf.mxu0 }
 0x113   :  { %v3137_v26 = vpop.f32.mrf.mxu0 }
 0x116   :  { %1048 = vmatmul.bf16.gmra.mxu0 %v930_v23 }
 0x123   :  { %v1014_v30 = vpop.f32.mrf.mxu0 }
 0x126   :  { %1053 = vmatmul.bf16.gmra.mxu0 %v931_v31 }
 0x12b   :  { %v1016_v39 = vpop.f32.mrf.mxu0 }
 0x12c   :  { %v1017_v40 = vadd.f32 %v1016_v39, %v3147_v1 }
 0x12e   :  { %v1175_v59 = vmax.f32 %v1017_v40, 0.0 }
 0x133   :  { %v1019_v44 = vpop.f32.mrf.mxu0 }
 0x134   :  { %v1020_v31 = vadd.f32 %v1019_v44, %v3147_v1  ;;  %v2850_v44 = vld [vmem:[#allocation5 + $0xd0] sm:$0xff] }
 0x135   :  { %814 = vmatpush.bf16.msrb.mxu2 %v2850_v44 }
 0x136   :  { %1058 = vmatmul.bf16.gmra.mxu0 %v932_v45  ;;  %v1176_v54 = vmax.f32 %v1020_v31, 0.0  ;;  %v570_v31 = vpop.f32.mrf.mxu3 }
 0x13b   :  { %v1021_v47 = vpop.f32.mrf.mxu0 }
 0x13c   :  { %v1022_v23 = vadd.f32 %v1021_v47, %v3147_v1 }
 0x13e   :  { %v1177_v45 = vmax.f32 %v1022_v23, 0.0  ;;  %v1239_v23 = vpack.c.bf16 %v1175_v59, %v1175_v59 }
 0x143   :  { %v1024_v50 = vpop.f32.mrf.mxu0 }
 0x144   :  { %v1025_v13 = vadd.f32 %v1024_v50, %v3147_v1  ;;  %v1015_v50 = vadd.f32 %v1014_v30, %v3147_v1  ;;  %v2849_v30 = vld [vmem:[#allocation5 + $0xc8] sm:$0xff] }
 0x145   :  { %815 = vmatpush.bf16.msrb.mxu2 %v2849_v30 }
 0x146   :  { %1063 = vmatmul.bf16.gmra.mxu0 %v933_v51  ;;  %v1178_v32 = vmax.f32 %v1025_v13, 0.0  ;;  %v1174_v13 = vmax.f32 %v1015_v50, 0.0 }
 0x148   :  { %v1242_v47 = vpack.c.bf16 %v1178_v32, %v1178_v32  ;;  %v1238_v32 = vpack.c.bf16 %v1174_v13, %v1174_v13 }
 0x14a   :  { %v1310_v43 = vunpack.c.l.b16 %v1238_v32 }
 0x14b   :  { %v1026_v55 = vpop.f32.mrf.mxu0 }
 0x14c   :  { %v1027_v11 = vadd.f32 %v1026_v55, %v3147_v1 }
 0x14e   :  { %v1179_v25 = vmax.f32 %v1027_v11, 0.0  ;;  %v3163_v11 = vld [vmem:[#allocation2 + $0xb8] sm:$0xff] }
 0x14f   :  { %2591 = vmatmul.msk.bf16.gmra.mxu1 %vm286_vm0, %v3163_v11 }
 0x150   :  { %v1243_v49 = vpack.c.bf16 %v1179_v25, %v1179_v25 }
 0x153   :  { %v1029_v63 = vpop.f32.mrf.mxu0 }
 0x154   :  { %v1030_v9 = vadd.f32 %v1029_v63, %v3147_v1  ;;  %v1241_v63 = vpack.c.bf16 %v1177_v45, %v1177_v45  ;;  %v3167_v45 = vld [vmem:[#allocation2 + $0xc0] sm:$0xff] }
 0x156   :  { %1068 = vmatmul.bf16.gmra.mxu0 %v934_v2  ;;  %v1180_v20 = vmax.f32 %v1030_v9, 0.0  ;;  %v1315_v2 = vunpack.c.l.b16 %v1243_v49  ;;  %v935_v9 = vpack.c.bf16 %v565_v8, %v563_v56  ;;  %v1313_v25 = vunpack.c.l.b16 %v1241_v63 }
 0x158   :  { %v1244_v34 = vpack.c.bf16 %v1180_v20, %v1180_v20  ;;  %v1240_v20 = vpack.c.bf16 %v1176_v54, %v1176_v54  ;;  %v936_v54 = vpack.c.bf16 %v570_v31, %v568_v42  ;;  %v3179_v42 = vld [vmem:[#allocation2 + $0xd0] sm:$0xff] }
 0x15a   :  { %v1316_v55 = vunpack.c.l.b16 %v1244_v34  ;;  %v1312_v56 = vunpack.c.l.b16 %v1240_v20  ;;  %v2848_v34 = vld [vmem:[#allocation5 + $0xc0] sm:$0xff] }
 0x15b   :  { %v1031_v21 = vpop.f32.mrf.mxu0  ;;  %816 = vmatpush.bf16.msrb.mxu2 %v2848_v34 }
 0x15c   :  { %v1032_v28 = vadd.f32 %v1031_v21, %v3147_v1  ;;  %v1314_v21 = vunpack.c.l.b16 %v1242_v47  ;;  %v1319_v40 = vpack.c.b16 %v1313_v25, %v1312_v56 }
 0x15e   :  { %v1181_v36 = vmax.f32 %v1032_v28, 0.0  ;;  %v1320_v28 = vpack.c.b16 %v1315_v2, %v1314_v21  ;;  %2624 = vmatmul.msk.bf16.vlgmr.msrb.gmra.mxu2 %vm286_vm0, %v3167_v45 }
 0x160   :  { %v1245_v51 = vpack.c.bf16 %v1181_v36, %v1181_v36  ;;  %v1311_v36 = vunpack.c.l.b16 %v1239_v23 }
 0x162   :  { %v1317_v58 = vunpack.c.l.b16 %v1245_v51  ;;  %v1318_v49 = vpack.c.b16 %v1311_v36, %v1310_v43  ;;  %v573_v51 = vpop.f32.mrf.mxu3  ;;  %v3191_v36 = vld [vmem:[#allocation2 + $0xd8] sm:$0xff] }
 0x163   :  { %v3161_v60 = vpop.f32.mrf.mxu0 }
 0x164   :  { %v1321_v39 = vpack.c.b16 %v1317_v58, %v1316_v55  ;;  %v3173_v58 = vld [vmem:[#allocation2 + $0xc8] sm:$0xff] }
 0x166   :  { %1073 = vmatmul.bf16.gmra.mxu0 %v935_v9  ;;  %1330 = vmatpush.bf16.msra.mxu1 %v1321_v39 }
 0x16a   :  { %1331 = vmatpush.bf16.msra.mxu1 %v1320_v28  ;;  %v575_v55 = vpop.f32.mrf.mxu3 }
 0x16b   :  { %v1036_v8 = vpop.f32.mrf.mxu0  ;;  %v937_v44 = vpack.c.bf16 %v575_v55, %v573_v51 }
 0x16e   :  { %1332 = vmatpush.bf16.msra.mxu1 %v1319_v40  ;;  %2625 = vmatmul.msk.bf16.gmra.mxu2 %vm286_vm0, %v3173_v58  ;;  %v2855_v40 = vld [vmem:[#allocation5 + $0xf8] sm:$0xff] }
 0x16f   :  { %898 = vmatpush.bf16.msrb.mxu3 %v2855_v40 }
 0x172   :  { %1333 = vmatpush.bf16.msra.mxu1 %v1318_v49  ;;  %v578_v63 = vpop.f32.mrf.mxu3 }
 0x173   :  { %v1039_v50 = vpop.f32.mrf.mxu0 }
 0x174   :  { %v1040_v31 = vadd.f32 %v1039_v50, %v3147_v1 }
 0x175   :  { %2696 = vmatmul.msk.bf16.vlgmr.msra.gmra.mxu1 %vm286_vm0, %v3043_v4 }
 0x176   :  { %1078 = vmatmul.bf16.gmra.mxu0 %v936_v54  ;;  %v1035_v54 = vadd.f32 %v3161_v60, %v3147_v1  ;;  %v2853_v60 = vld [vmem:[#allocation5 + $0xe8] sm:$0xff] }
 0x17a   :  { %v580_v4 = vpop.f32.mrf.mxu3 }
 0x17b   :  { %v1041_v47 = vpop.f32.mrf.mxu0  ;;  %v938_v39 = vpack.c.bf16 %v580_v4, %v578_v63 }
 0x17c   :  { %v1042_v23 = vadd.f32 %v1041_v47, %v3147_v1  ;;  %v1184_v47 = vmax.f32 %v1040_v31, 0.0 }
 0x17e   :  { %2626 = vmatmul.msk.bf16.gmra.mxu2 %vm286_vm0, %v3179_v42  ;;  %v1185_v43 = vmax.f32 %v1042_v23, 0.0 }
 0x180   :  { %v1249_v4 = vpack.c.bf16 %v1185_v43, %v1185_v43 }
 0x183   :  { %v1044_v59 = vpop.f32.mrf.mxu0 }
 0x184   :  { %v1045_v21 = vadd.f32 %v1044_v59, %v3147_v1 }
 0x185   :  { %2697 = vmatmul.msk.bf16.gmra.mxu1 %vm286_vm0, %v3047_v7 }
 0x186   :  { %1083 = vmatmul.bf16.gmra.mxu0 %v937_v44  ;;  %v1186_v32 = vmax.f32 %v1045_v21, 0.0  ;;  %v939_v44 = vpack.c.bf16 %v3125_v0, %v3119_v61 }
 0x188   :  { %v1250_v50 = vpack.c.bf16 %v1186_v32, %v1186_v32 }
 0x18a   :  { %v1367_v21 = vunpack.c.l.b16 %v1250_v50  ;;  %v942_v50 = vpack.c.bf16 %v3137_v26, %v3135_v22 }
 0x18b   :  { %v1046_v2 = vpop.f32.mrf.mxu0 }
 0x18c   :  { %v1047_v20 = vadd.f32 %v1046_v2, %v3147_v1 }
 0x18e   :  { %v1187_v25 = vmax.f32 %v1047_v20, 0.0  ;;  %2627 = vmatmul.msk.bf16.gmra.mxu2 %vm286_vm0, %v3191_v36  ;;  %v1248_v20 = vpack.c.bf16 %v1184_v47, %v1184_v47 }
 0x190   :  { %v1251_v49 = vpack.c.bf16 %v1187_v25, %v1187_v25  ;;  %v1365_v23 = vunpack.c.l.b16 %v1248_v20 }
 0x193   :  { %v1049_v9 = vpop.f32.mrf.mxu0 }
 0x194   :  { %v1050_v13 = vadd.f32 %v1049_v9, %v3147_v1  ;;  %v1368_v9 = vunpack.c.l.b16 %v1251_v49  ;;  %v3212_v49 = vld [vmem:[#allocation2 + $0xe8] sm:$0xff] }
 0x195   :  { %2698 = vmatmul.msk.bf16.gmra.mxu1 %vm286_vm0, %v3055_v15  ;;  %v1037_v15 = vadd.f32 %v1036_v8, %v3147_v1  ;;  %v2854_v8 = vld [vmem:[#allocation5 + $0xf0] sm:$0xff] }
 0x196   :  { %1088 = vmatmul.bf16.gmra.mxu0 %v938_v39  ;;  %v1188_v7 = vmax.f32 %v1050_v13, 0.0  ;;  %899 = vmatpush.bf16.msrb.mxu3 %v2854_v8  ;;  %v1182_v13 = vmax.f32 %v1035_v54, 0.0  ;;  %v1373_v61 = vpack.c.b16 %v1368_v9, %v1367_v21  ;;  %v941_v54 = vpack.c.bf16 %v3133_v14, %v3131_v10 }
 0x197   :  { %v1183_v2 = vmax.f32 %v1037_v15, 0.0  ;;  %v940_v15 = vpack.c.bf16 %v3129_v6, %v3127_v3  ;;  %v733_v3 = vpop.f32.mrf.mxu1  ;;  %v3220_v6 = vld [vmem:[#allocation2 + $0xf0] sm:$0xff] }
 0x198   :  { %v1252_v56 = vpack.c.bf16 %v1188_v7, %v1188_v7  ;;  %v1246_v0 = vpack.c.bf16 %v1182_v13, %v1182_v13 }
 0x199   :  { %v1247_v7 = vpack.c.bf16 %v1183_v2, %v1183_v2 }
 0x19a   :  { %v1369_v55 = vunpack.c.l.b16 %v1252_v56  ;;  %900 = vmatpush.bf16.msrb.mxu3 %v2853_v60  ;;  %v1363_v56 = vunpack.c.l.b16 %v1246_v0 }
 0x19b   :  { %v1051_v30 = vpop.f32.mrf.mxu0  ;;  %v1364_v31 = vunpack.c.l.b16 %v1247_v7 }
 0x19c   :  { %v1052_v28 = vadd.f32 %v1051_v30, %v3147_v1  ;;  %v1366_v30 = vunpack.c.l.b16 %v1249_v4 }
 0x19d   :  { %v1371_v40 = vpack.c.b16 %v1364_v31, %v1363_v56 }
 0x19e   :  { %v1189_v34 = vmax.f32 %v1052_v28, 0.0  ;;  %v2852_v28 = vld [vmem:[#allocation5 + $0xe0] sm:$0xff]  ;;  %v1372_v32 = vpack.c.b16 %v1366_v30, %v1365_v23 }
 0x19f   :  { %901 = vmatpush.bf16.msrb.mxu3 %v2852_v28 }
 0x1a0   :  { %v1253_v51 = vpack.c.bf16 %v1189_v34, %v1189_v34  ;;  %v3204_v34 = vld [vmem:[#allocation2 + $0xe0] sm:$0xff] }
 0x1a2   :  { %v1370_v59 = vunpack.c.l.b16 %v1253_v51  ;;  %2660 = vmatmul.msk.bf16.vlgmr.msrb.gmra.mxu3 %vm286_vm0, %v3204_v34 }
 0x1a3   :  { %v3200_v63 = vpop.f32.mrf.mxu0 }
 0x1a4   :  { %v1374_v39 = vpack.c.b16 %v1370_v59, %v1369_v55  ;;  %v735_v55 = vpop.f32.mrf.mxu1  ;;  %v1055_v30 = vadd.f32 %v3200_v63, %v3147_v1 }
 0x1a5   :  { %2699 = vmatmul.msk.bf16.gmra.mxu1 %vm286_vm0, %v3063_v17 }
 0x1a6   :  { %1093 = vmatmul.bf16.gmra.mxu0 %v939_v44  ;;  %1383 = vmatpush.bf16.msra.mxu2 %v1374_v39 }
 0x1aa   :  { %1384 = vmatpush.bf16.msra.mxu2 %v1373_v61 }
 0x1ab   :  { %v1056_v25 = vpop.f32.mrf.mxu0 }
 0x1ac   :  { %v1057_v13 = vadd.f32 %v1056_v25, %v3147_v1  ;;  %v738_v20 = vpop.f32.mrf.mxu1 }
 0x1ae   :  { %1385 = vmatpush.bf16.msra.mxu2 %v1372_v32  ;;  %v1191_v31 = vmax.f32 %v1057_v13, 0.0 }
 0x1b2   :  { %1386 = vmatpush.bf16.msra.mxu2 %v1371_v40  ;;  %2661 = vmatmul.msk.bf16.gmra.mxu3 %vm286_vm0, %v3212_v49 }
 0x1b3   :  { %v1059_v17 = vpop.f32.mrf.mxu0 }
 0x1b4   :  { %v1060_v22 = vadd.f32 %v1059_v17, %v3147_v1  ;;  %v943_v17 = vpack.c.bf16 %v735_v55, %v733_v3 }
 0x1b5   :  { %2700 = vmatmul.msk.bf16.vlgmr.msra.gmra.mxu2 %vm286_vm0, %v3051_v12 }
 0x1b6   :  { %1098 = vmatmul.bf16.gmra.mxu0 %v940_v15  ;;  %v1192_v61 = vmax.f32 %v1060_v22, 0.0  ;;  %v1190_v15 = vmax.f32 %v1055_v30, 0.0 }
 0x1bb   :  { %v1061_v43 = vpop.f32.mrf.mxu0 }
 0x1bc   :  { %v1062_v8 = vadd.f32 %v1061_v43, %v3147_v1  ;;  %v1256_v43 = vpack.c.bf16 %v1192_v61, %v1192_v61 }
 0x1be   :  { %v1193_v21 = vmax.f32 %v1062_v8, 0.0 }
 0x1c0   :  { %v1257_v56 = vpack.c.bf16 %v1193_v21, %v1193_v21 }
 0x1c2   :  { %2662 = vmatmul.msk.bf16.gmra.mxu3 %vm286_vm0, %v3220_v6  ;;  %v1419_v63 = vunpack.c.l.b16 %v1257_v56 }
 0x1c3   :  { %v1064_v51 = vpop.f32.mrf.mxu0 }
 0x1c4   :  { %v1065_v14 = vadd.f32 %v1064_v51, %v3147_v1 }
 0x1c5   :  { %2701 = vmatmul.msk.bf16.gmra.mxu2 %vm286_vm0, %v3059_v16 }
 0x1c6   :  { %1103 = vmatmul.bf16.gmra.mxu0 %v941_v54  ;;  %v1194_v26 = vmax.f32 %v1065_v14, 0.0  ;;  %v1255_v54 = vpack.c.bf16 %v1191_v31, %v1191_v31 }
 0x1c8   :  { %v1258_v0 = vpack.c.bf16 %v1194_v26, %v1194_v26  ;;  %v1417_v14 = vunpack.c.l.b16 %v1255_v54 }
 0x1ca   :  { %v1420_v51 = vunpack.c.l.b16 %v1258_v0 }
 0x1cb   :  { %v1066_v47 = vpop.f32.mrf.mxu0 }
 0x1cc   :  { %v1067_v16 = vadd.f32 %v1066_v47, %v3147_v1 }
 0x1ce   :  { %v1195_v2 = vmax.f32 %v1067_v16, 0.0 }
 0x1d0   :  { %v1259_v60 = vpack.c.bf16 %v1195_v2, %v1195_v2 }
 0x1d2   :  { %v1421_v40 = vunpack.c.l.b16 %v1259_v60 }
 0x1d3   :  { %v1069_v12 = vpop.f32.mrf.mxu0 }
 0x1d4   :  { %v1070_v10 = vadd.f32 %v1069_v12, %v3147_v1  ;;  %v1426_v47 = vpack.c.b16 %v1421_v40, %v1420_v51  ;;  %v740_v12 = vpop.f32.mrf.mxu1 }
 0x1d5   :  { %2702 = vmatmul.msk.bf16.gmra.mxu2 %vm286_vm0, %v3067_v18  ;;  %v3234_v18 = vld [vmem:[#allocation2 + $0xf8] sm:$0xff]  ;;  %v944_v8 = vpack.c.bf16 %v740_v12, %v738_v20 }
 0x1d6   :  { %1108 = vmatmul.bf16.gmra.mxu0 %v942_v50  ;;  %v1196_v59 = vmax.f32 %v1070_v10, 0.0  ;;  %2663 = vmatmul.msk.bf16.gmra.mxu3 %vm286_vm0, %v3234_v18  ;;  %v1254_v50 = vpack.c.bf16 %v1190_v15, %v1190_v15  ;;  %v1418_v10 = vunpack.c.l.b16 %v1256_v43 }
 0x1d8   :  { %v1260_v9 = vpack.c.bf16 %v1196_v59, %v1196_v59  ;;  %v1425_v59 = vpack.c.b16 %v1419_v63, %v1418_v10  ;;  %v1416_v3 = vunpack.c.l.b16 %v1254_v50 }
 0x1da   :  { %v1422_v23 = vunpack.c.l.b16 %v1260_v9  ;;  %v1424_v55 = vpack.c.b16 %v1417_v14, %v1416_v3 }
 0x1db   :  { %v1071_v44 = vpop.f32.mrf.mxu0 }
 0x1dc   :  { %v1072_v4 = vadd.f32 %v1071_v44, %v3147_v1 }
 0x1de   :  { %v1197_v39 = vmax.f32 %v1072_v4, 0.0 }
 0x1e0   :  { %v1261_v7 = vpack.c.bf16 %v1197_v39, %v1197_v39 }
 0x1e1   :  { %v818_v13 = vpop.f32.mrf.mxu2 }
 0x1e2   :  { %v1423_v28 = vunpack.c.l.b16 %v1261_v7 }
 0x1e3   :  { %v1074_v32 = vpop.f32.mrf.mxu0 }
 0x1e4   :  { %v1427_v25 = vpack.c.b16 %v1423_v28, %v1422_v23  ;;  %v1075_v63 = vadd.f32 %v1074_v32, %v3147_v1 }
 0x1e5   :  { %2703 = vmatmul.msk.bf16.gmra.mxu2 %vm286_vm0, %v3075_v24  ;;  %v743_v24 = vpop.f32.mrf.mxu1 }
 0x1e6   :  { %1113 = vmatmul.bf16.gmra.mxu0 %v943_v17  ;;  %1436 = vmatpush.bf16.msra.mxu3 %v1427_v25 }
 0x1e9   :  { %v820_v30 = vpop.f32.mrf.mxu2 }
 0x1ea   :  { %1437 = vmatpush.bf16.msra.mxu3 %v1426_v47 }
 0x1eb   :  { %v1076_v16 = vpop.f32.mrf.mxu0 }
 0x1ed   :  { %v745_v4 = vpop.f32.mrf.mxu1 }
 0x1ee   :  { %1438 = vmatpush.bf16.msra.mxu3 %v1425_v59  ;;  %v945_v26 = vpack.c.bf16 %v745_v4, %v743_v24  ;;  %v947_v24 = vpack.c.bf16 %v820_v30, %v818_v13 }
 0x1f1   :  { %v823_v15 = vpop.f32.mrf.mxu2 }
 0x1f2   :  { %1439 = vmatpush.bf16.msra.mxu3 %v1424_v55 }
 0x1f3   :  { %v1079_v44 = vpop.f32.mrf.mxu0 }
 0x1f4   :  { %v1080_v56 = vadd.f32 %v1079_v44, %v3147_v1 }
 0x1f5   :  { %2704 = vmatmul.msk.bf16.vlgmr.msra.gmra.mxu3 %vm286_vm0, %v3083_v29  ;;  %v748_v9 = vpop.f32.mrf.mxu1 }
 0x1f6   :  { %1118 = vmatmul.bf16.gmra.mxu0 %v944_v8  ;;  %v1200_v47 = vmax.f32 %v1080_v56, 0.0 }
 0x1f8   :  { %v1264_v8 = vpack.c.bf16 %v1200_v47, %v1200_v47 }
 0x1fb   :  { %v1081_v2 = vpop.f32.mrf.mxu0 }
 0x1fc   :  { %v1082_v23 = vadd.f32 %v1081_v2, %v3147_v1 }
 0x1fd   :  { %v750_v21 = vpop.f32.mrf.mxu1 }
 0x1fe   :  { %v946_v7 = vpack.c.bf16 %v750_v21, %v748_v9  ;;  %v1201_v43 = vmax.f32 %v1082_v23, 0.0 }
 0x200   :  { %v1265_v3 = vpack.c.bf16 %v1201_v43, %v1201_v43 }
 0x202   :  { %v1472_v32 = vunpack.c.l.b16 %v1265_v3 }
 0x203   :  { %v1084_v22 = vpop.f32.mrf.mxu0 }
 0x204   :  { %v1085_v61 = vadd.f32 %v1084_v22, %v3147_v1 }
 0x205   :  { %2705 = vmatmul.msk.bf16.gmra.mxu3 %vm286_vm0, %v3089_v35 }
 0x206   :  { %1123 = vmatmul.bf16.gmra.mxu0 %v945_v26  ;;  %v1202_v40 = vmax.f32 %v1085_v61, 0.0  ;;  %v825_v26 = vpop.f32.mrf.mxu2 }
 0x208   :  { %v1266_v12 = vpack.c.bf16 %v1202_v40, %v1202_v40 }
 0x20a   :  { %v1473_v2 = vunpack.c.l.b16 %v1266_v12 }
 0x20b   :  { %v1086_v39 = vpop.f32.mrf.mxu0 }
 0x20c   :  { %v1087_v20 = vadd.f32 %v1086_v39, %v3147_v1  ;;  %v1471_v39 = vunpack.c.l.b16 %v1264_v8 }
 0x20e   :  { %v1203_v28 = vmax.f32 %v1087_v20, 0.0  ;;  %v948_v20 = vpack.c.bf16 %v825_v26, %v823_v15 }
 0x210   :  { %v1267_v51 = vpack.c.bf16 %v1203_v28, %v1203_v28 }
 0x212   :  { %v1474_v55 = vunpack.c.l.b16 %v1267_v51 }
 0x213   :  { %v1089_v60 = vpop.f32.mrf.mxu0 }
 0x214   :  { %v1090_v29 = vadd.f32 %v1089_v60, %v3147_v1  ;;  %v1479_v22 = vpack.c.b16 %v1474_v55, %v1473_v2 }
 0x215   :  { %2706 = vmatmul.msk.bf16.gmra.mxu3 %vm286_vm0, %v3097_v38  ;;  %v1077_v38 = vadd.f32 %v1076_v16, %v3147_v1  ;;  %v1198_v16 = vmax.f32 %v1075_v63, 0.0 }
 0x216   :  { %1128 = vmatmul.bf16.gmra.mxu0 %v946_v7  ;;  %v1204_v0 = vmax.f32 %v1090_v29, 0.0  ;;  %v1478_v7 = vpack.c.b16 %v1472_v32, %v1471_v39 }
 0x217   :  { %v1199_v14 = vmax.f32 %v1077_v38, 0.0  ;;  %v1262_v9 = vpack.c.bf16 %v1198_v16, %v1198_v16 }
 0x218   :  { %v1268_v17 = vpack.c.bf16 %v1204_v0, %v1204_v0 }
 0x219   :  { %v1263_v4 = vpack.c.bf16 %v1199_v14, %v1199_v14  ;;  %v1469_v13 = vunpack.c.l.b16 %v1262_v9 }
 0x21a   :  { %v1475_v50 = vunpack.c.l.b16 %v1268_v17 }
 0x21b   :  { %v1091_v35 = vpop.f32.mrf.mxu0  ;;  %v1470_v60 = vunpack.c.l.b16 %v1263_v4 }
 0x21c   :  { %v1092_v31 = vadd.f32 %v1091_v35, %v3147_v1 }
 0x21d   :  { %v1477_v30 = vpack.c.b16 %v1470_v60, %v1469_v13 }
 0x21e   :  { %v1205_v25 = vmax.f32 %v1092_v31, 0.0 }
 0x220   :  { %v1269_v54 = vpack.c.bf16 %v1205_v25, %v1205_v25 }
 0x222   :  { %v1476_v10 = vunpack.c.l.b16 %v1269_v54 }
 0x223   :  { %v1094_v59 = vpop.f32.mrf.mxu0 }
 0x224   :  { %v1480_v44 = vpack.c.b16 %v1476_v10, %v1475_v50  ;;  %v1095_v16 = vadd.f32 %v1094_v59, %v3147_v1 }
 0x225   :  { %2707 = vmatmul.msk.bf16.gmra.mxu3 %vm286_vm0, %v3103_v41  ;;  %v828_v41 = vpop.f32.mrf.mxu2  ;;  %v903_v56 = vpop.f32.mrf.mxu3 }
 0x226   :  { %1133 = vmatmul.bf16.gmra.mxu0 %v947_v24  ;;  %1489 = vmatpush.bf16.msrb.mxu1 %v1480_v44 }
 0x22a   :  { %1490 = vmatpush.bf16.msrb.mxu1 %v1479_v22 }
 0x22b   :  { %v1096_v21 = vpop.f32.mrf.mxu0 }
 0x22d   :  { %v830_v0 = vpop.f32.mrf.mxu2  ;;  %v905_v38 = vpop.f32.mrf.mxu3 }
 0x22e   :  { %1491 = vmatpush.bf16.msrb.mxu1 %v1478_v7  ;;  %v949_v23 = vpack.c.bf16 %v830_v0, %v828_v41  ;;  %v951_v60 = vpack.c.bf16 %v905_v38, %v903_v56 }
 0x232   :  { %1492 = vmatpush.bf16.msrb.mxu1 %v1477_v30 }
 0x233   :  { %v1099_v29 = vpop.f32.mrf.mxu0 }
 0x234   :  { %v1100_v12 = vadd.f32 %v1099_v29, %v3147_v1 }
 0x235   :  { %2708 = vmatmul.msk.bf16.vlgmr.msrb.gmra.mxu1 %vm286_vm0, %v3107_v48  ;;  %v833_v28 = vpop.f32.mrf.mxu2  ;;  %v908_v3 = vpop.f32.mrf.mxu3 }
 0x236   :  { %1138 = vmatmul.bf16.gmra.mxu0 %v948_v20  ;;  %v1208_v8 = vmax.f32 %v1100_v12, 0.0 }
 0x238   :  { %v1272_v13 = vpack.c.bf16 %v1208_v8, %v1208_v8 }
 0x23a   :  { %v1524_v0 = vunpack.c.l.b16 %v1272_v13 }
 0x23b   :  { %v1101_v61 = vpop.f32.mrf.mxu0 }
 0x23c   :  { %v1102_v54 = vadd.f32 %v1101_v61, %v3147_v1 }
 0x23d   :  { %v835_v40 = vpop.f32.mrf.mxu2  ;;  %v910_v20 = vpop.f32.mrf.mxu3 }
 0x23e   :  { %v950_v25 = vpack.c.bf16 %v835_v40, %v833_v28  ;;  %v1209_v55 = vmax.f32 %v1102_v54, 0.0 }
 0x240   :  { %v1273_v9 = vpack.c.bf16 %v1209_v55, %v1209_v55 }
 0x242   :  { %v1525_v59 = vunpack.c.l.b16 %v1273_v9 }
 0x243   :  { %v1104_v35 = vpop.f32.mrf.mxu0 }
 0x244   :  { %v1105_v43 = vadd.f32 %v1104_v35, %v3147_v1  ;;  %v1531_v28 = vpack.c.b16 %v1525_v59, %v1524_v0 }
 0x245   :  { %2709 = vmatmul.msk.bf16.gmra.mxu1 %vm286_vm0, %v3111_v52 }
 0x246   :  { %1143 = vmatmul.bf16.gmra.mxu0 %v949_v23  ;;  %v1210_v50 = vmax.f32 %v1105_v43, 0.0 }
 0x248   :  { %v1274_v2 = vpack.c.bf16 %v1210_v50, %v1210_v50 }
 0x24a   :  { %v1526_v30 = vunpack.c.l.b16 %v1274_v2 }
 0x24b   :  { %v1106_v31 = vpop.f32.mrf.mxu0 }
 0x24c   :  { %v1107_v15 = vadd.f32 %v1106_v31, %v3147_v1 }
 0x24e   :  { %v1211_v63 = vmax.f32 %v1107_v15, 0.0 }
 0x250   :  { %v1275_v24 = vpack.c.bf16 %v1211_v63, %v1211_v63 }
 0x252   :  { %v1527_v39 = vunpack.c.l.b16 %v1275_v24 }
 0x253   :  { %v1109_v17 = vpop.f32.mrf.mxu0 }
 0x254   :  { %v1110_v48 = vadd.f32 %v1109_v17, %v3147_v1  ;;  %v1532_v29 = vpack.c.b16 %v1527_v39, %v1526_v30  ;;  %v952_v17 = vpack.c.bf16 %v910_v20, %v908_v3 }
 0x255   :  { %2710 = vmatmul.msk.bf16.gmra.mxu1 %vm286_vm0, %v3115_v57  ;;  %v1097_v57 = vadd.f32 %v1096_v21, %v3147_v1  ;;  %v1206_v21 = vmax.f32 %v1095_v16, 0.0 }
 0x256   :  { %1148 = vmatmul.bf16.gmra.mxu0 %v950_v25  ;;  %v1212_v51 = vmax.f32 %v1110_v48, 0.0 }
 0x257   :  { %v1207_v22 = vmax.f32 %v1097_v57, 0.0  ;;  %v1270_v61 = vpack.c.bf16 %v1206_v21, %v1206_v21 }
 0x258   :  { %v1276_v10 = vpack.c.bf16 %v1212_v51, %v1212_v51 }
 0x259   :  { %v1271_v41 = vpack.c.bf16 %v1207_v22, %v1207_v22  ;;  %v1522_v31 = vunpack.c.l.b16 %v1270_v61 }
 0x25a   :  { %v1528_v4 = vunpack.c.l.b16 %v1276_v10 }
 0x25b   :  { %v1111_v52 = vpop.f32.mrf.mxu0  ;;  %v1523_v23 = vunpack.c.l.b16 %v1271_v41 }
 0x25c   :  { %v1112_v47 = vadd.f32 %v1111_v52, %v3147_v1 }
 0x25d   :  { %v1530_v56 = vpack.c.b16 %v1523_v23, %v1522_v31 }
 0x25e   :  { %v1213_v14 = vmax.f32 %v1112_v47, 0.0 }
 0x260   :  { %v1277_v44 = vpack.c.bf16 %v1213_v14, %v1213_v14 }
 0x262   :  { %v1529_v32 = vunpack.c.l.b16 %v1277_v44 }
 0x263   :  { %v1114_v26 = vpop.f32.mrf.mxu0 }
 0x264   :  { %v1533_v7 = vpack.c.b16 %v1529_v32, %v1528_v4  ;;  %v1115_v4 = vadd.f32 %v1114_v26, %v3147_v1 }
 0x265   :  { %2711 = vmatmul.msk.bf16.gmra.mxu1 %vm286_vm0, %v3121_v62  ;;  %v913_v62 = vpop.f32.mrf.mxu3 }
 0x266   :  { %1153 = vmatmul.bf16.gmra.mxu0 %v951_v60  ;;  %1542 = vmatpush.bf16.msrb.mxu2 %v1533_v7  ;;  %v1214_v41 = vmax.f32 %v1115_v4, 0.0 }
 0x268   :  { %v1278_v0 = vpack.c.bf16 %v1214_v41, %v1214_v41 }
 0x26a   :  { %1543 = vmatpush.bf16.msrb.mxu2 %v1532_v29 }
 0x26b   :  { %v1116_v35 = vpop.f32.mrf.mxu0 }
 0x26d   :  { %v915_v38 = vpop.f32.mrf.mxu3 }
 0x26e   :  { %1544 = vmatpush.bf16.msrb.mxu2 %v1531_v28  ;;  %v953_v15 = vpack.c.bf16 %v915_v38, %v913_v62  ;;  %v3301_v38 = vld [vmem:[#allocation7 + $0x70] sm:$0xff] }
 0x272   :  { %1545 = vmatpush.bf16.msrb.mxu2 %v1530_v56  ;;  %v1575_v56 = vunpack.c.l.b16 %v1278_v0 }
 0x273   :  { %v1119_v40 = vpop.f32.mrf.mxu0 }
 0x274   :  { %v1120_v3 = vadd.f32 %v1119_v40, %v3147_v1 }
 0x275   :  { %2712 = vmatmul.msk.bf16.vlgmr.msrb.gmra.mxu2 %vm286_vm0, %v3071_v19  ;;  %v918_v43 = vpop.f32.mrf.mxu3 }
 0x276   :  { %1158 = vmatmul.bf16.gmra.mxu0 %v952_v17  ;;  %v1216_v32 = vmax.f32 %v1120_v3, 0.0  ;;  %v3293_v17 = vld [vmem:[#allocation7 + $0x80] sm:$0xff] }
 0x278   :  { %v1280_v59 = vpack.c.bf16 %v1216_v32, %v1216_v32 }
 0x27b   :  { %v1121_v25 = vpop.f32.mrf.mxu0 }
 0x27d   :  { %v920_v52 = vpop.f32.mrf.mxu3 }
 0x27e   :  { %v954_v63 = vpack.c.bf16 %v920_v52, %v918_v43  ;;  %v3307_v43 = vld [vmem:[#allocation7 + $0x60] sm:$0xff] }
 0x283   :  { %v1124_v48 = vpop.f32.mrf.mxu0 }
 0x284   :  { %v1125_v12 = vadd.f32 %v1124_v48, %v3147_v1  ;;  %v3304_v48 = vld [vmem:[#allocation7 + $0x68] sm:$0xff] }
 0x285   :  { %2713 = vmatmul.msk.bf16.gmra.mxu2 %vm286_vm0, %v3079_v27  ;;  %v1122_v27 = vadd.f32 %v1121_v25, %v3147_v1 }
 0x286   :  { %1163 = vmatmul.bf16.gmra.mxu0 %v953_v15  ;;  %v1218_v55 = vmax.f32 %v1125_v12, 0.0 }
 0x287   :  { %v1217_v16 = vmax.f32 %v1122_v27, 0.0 }
 0x288   :  { %v1282_v22 = vpack.c.bf16 %v1218_v55, %v1218_v55 }
 0x289   :  { %v1281_v21 = vpack.c.bf16 %v1217_v16, %v1217_v16 }
 0x28a   :  { %v1579_v29 = vunpack.c.l.b16 %v1282_v22 }
 0x28b   :  { %v1126_v51 = vpop.f32.mrf.mxu0  ;;  %v1578_v61 = vunpack.c.l.b16 %v1281_v21 }
 0x28c   :  { %v1127_v19 = vadd.f32 %v1126_v51, %v3147_v1  ;;  %v3314_v51 = vpop.f32.mrf.mxu1 }
 0x28e   :  { %v1219_v14 = vmax.f32 %v1127_v19, 0.0 }
 0x290   :  { %v1283_v8 = vpack.c.bf16 %v1219_v14, %v1219_v14 }
 0x292   :  { %v1580_v13 = vunpack.c.l.b16 %v1283_v8 }
 0x293   :  { %v1129_v54 = vpop.f32.mrf.mxu0 }
 0x294   :  { %v1130_v47 = vadd.f32 %v1129_v54, %v3147_v1  ;;  %v1585_v26 = vpack.c.b16 %v1580_v13, %v1579_v29  ;;  %v3317_v54 = vld [vmem:[#allocation7 + $0x50] sm:$0xff] }
 0x295   :  { %2714 = vmatmul.msk.bf16.gmra.mxu2 %vm286_vm0, %v3087_v33  ;;  %v1117_v33 = vadd.f32 %v1116_v35, %v3147_v1  ;;  %v1577_v35 = vunpack.c.l.b16 %v1280_v59 }
 0x296   :  { %1168 = vmatmul.bf16.gmra.mxu0 %v954_v63  ;;  %v1220_v50 = vmax.f32 %v1130_v47, 0.0  ;;  %v3320_v63 = vld [vmem:[#allocation7 + $0x48] sm:$0xff]  ;;  %v3322_v47 = vpop.f32.mrf.mxu1 }
 0x297   :  { %v1215_v7 = vmax.f32 %v1117_v33, 0.0  ;;  %v1584_v31 = vpack.c.b16 %v1578_v61, %v1577_v35 }
 0x298   :  { %v1284_v24 = vpack.c.bf16 %v1220_v50, %v1220_v50  ;;  %v1441_v50 = vpop.f32.mrf.mxu3 }
 0x299   :  { %v1279_v20 = vpack.c.bf16 %v1215_v7, %v1215_v7 }
 0x29a   :  { %v1581_v9 = vunpack.c.l.b16 %v1284_v24 }
 0x29b   :  { %v1131_v10 = vpop.f32.mrf.mxu0  ;;  %v1576_v28 = vunpack.c.l.b16 %v1279_v20 }
 0x29c   :  { %v1132_v57 = vadd.f32 %v1131_v10, %v3147_v1 }
 0x29d   :  { %v1583_v62 = vpack.c.b16 %v1576_v28, %v1575_v56 }
 0x29e   :  { %v1221_v44 = vmax.f32 %v1132_v57, 0.0  ;;  %v3332_v24 = vpop.f32.mrf.mxu1 }
 0x2a0   :  { %v1285_v2 = vpack.c.bf16 %v1221_v44, %v1221_v44  ;;  %v1443_v13 = vpop.f32.mrf.mxu3 }
 0x2a2   :  { %v1582_v39 = vunpack.c.l.b16 %v1285_v2 }
 0x2a3   :  { %v3289_v60 = vpop.f32.mrf.mxu0 }
 0x2a4   :  { %v1586_v30 = vpack.c.b16 %v1582_v39, %v1581_v9  ;;  %v1135_v22 = vadd.f32 %v3289_v60, %v3147_v1 }
 0x2a5   :  { %2715 = vmatmul.msk.bf16.gmra.mxu2 %vm286_vm0, %v3095_v37  ;;  %v3298_v37 = vld [vmem:[#allocation7 + $0x78] sm:$0xff] }
 0x2a6   :  { %1595 = vmatpush.bf16.msrb.mxu3 %v1586_v30  ;;  %v1222_v61 = vmax.f32 %v1135_v22, 0.0  ;;  %v3342_v35 = vpop.f32.mrf.mxu1 }
 0x2aa   :  { %1596 = vmatpush.bf16.msrb.mxu3 %v1585_v26 }
 0x2ab   :  { %v1136_v23 = vpop.f32.mrf.mxu0 }
 0x2ac   :  { %v1137_v8 = vadd.f32 %v1136_v23, %v3147_v1 }
 0x2ae   :  { %1597 = vmatpush.bf16.msrb.mxu3 %v1584_v31  ;;  %v1223_v41 = vmax.f32 %v1137_v8, 0.0  ;;  %v1286_v31 = vpack.c.bf16 %v1222_v61, %v1222_v61 }
 0x2b0   :  { %v1287_v60 = vpack.c.bf16 %v1223_v41, %v1223_v41 }
 0x2b2   :  { %1598 = vmatpush.bf16.msrb.mxu3 %v1583_v62 }
 0x2b3   :  { %v1139_v40 = vpop.f32.mrf.mxu0 }
 0x2b4   :  { %v1140_v44 = vadd.f32 %v1139_v40, %v3147_v1  ;;  %v1629_v40 = vunpack.c.l.b16 %v1287_v60 }
 0x2b5   :  { %2716 = vmatmul.msk.bf16.vlgmr.msrb.gmra.mxu3 %vm286_vm0, %v3139_v46  ;;  %v3312_v46 = vld [vmem:[#allocation7 + $0x58] sm:$0xff] }
 0x2b6   :  { %2880 = vmatpush.bf16.msra.mxu3 %v3293_v17  ;;  %v1224_v9 = vmax.f32 %v1140_v44, 0.0 }
 0x2b8   :  { %v1288_v26 = vpack.c.bf16 %v1224_v9, %v1224_v9 }
 0x2ba   :  { %2881 = vmatpush.bf16.msra.mxu3 %v3298_v37  ;;  %v1630_v56 = vunpack.c.l.b16 %v1288_v26 }
 0x2bb   :  { %v1141_v25 = vpop.f32.mrf.mxu0 }
 0x2bc   :  { %v1142_v57 = vadd.f32 %v1141_v25, %v3147_v1 }
 0x2be   :  { %2882 = vmatpush.bf16.msra.mxu3 %v3301_v38  ;;  %v1225_v2 = vmax.f32 %v1142_v57, 0.0 }
 0x2c0   :  { %v1289_v59 = vpack.c.bf16 %v1225_v2, %v1225_v2 }
 0x2c2   :  { %2883 = vmatpush.bf16.msra.mxu3 %v3304_v48  ;;  %v1631_v23 = vunpack.c.l.b16 %v1289_v59 }
 0x2c3   :  { %v1144_v15 = vpop.f32.mrf.mxu0 }
 0x2c4   :  { %v1145_v10 = vadd.f32 %v1144_v15, %v3147_v1  ;;  %v1637_v25 = vpack.c.b16 %v1631_v23, %v1630_v56  ;;  %v1446_v15 = vpop.f32.mrf.mxu3 }
 0x2c5   :  { %2717 = vmatmul.msk.bf16.gmra.mxu3 %vm286_vm0, %v3143_v53 }
 0x2c6   :  { %2884 = vmatpush.bf16.msra.mxu3 %v3307_v43  ;;  %v1226_v33 = vmax.f32 %v1145_v10, 0.0 }
 0x2c8   :  { %v1290_v39 = vpack.c.bf16 %v1226_v33, %v1226_v33 }
 0x2ca   :  { %2885 = vmatpush.bf16.msra.mxu3 %v3312_v46  ;;  %v1632_v0 = vunpack.c.l.b16 %v1290_v39 }
 0x2cb   :  { %v1146_v52 = vpop.f32.mrf.mxu0 }
 0x2cc   :  { %v1147_v12 = vadd.f32 %v1146_v52, %v3147_v1  ;;  %v1628_v52 = vunpack.c.l.b16 %v1286_v31  ;;  %v1448_v10 = vpop.f32.mrf.mxu3 }
 0x2ce   :  { %2886 = vmatpush.bf16.msra.mxu3 %v3317_v54  ;;  %v1227_v3 = vmax.f32 %v1147_v12, 0.0 }
 0x2d0   :  { %v1291_v4 = vpack.c.bf16 %v1227_v3, %v1227_v3  ;;  %v1735_v3 = vpack.c.bf16 %v1448_v10, %v1446_v15 }
 0x2d2   :  { %2887 = vmatpush.bf16.msra.mxu3 %v3320_v63  ;;  %v1633_v29 = vunpack.c.l.b16 %v1291_v4 }
 0x2d3   :  { %v1149_v53 = vpop.f32.mrf.mxu0 }
 0x2d4   :  { %v1150_v19 = vadd.f32 %v1149_v53, %v3147_v1  ;;  %v1638_v28 = vpack.c.b16 %v1633_v29, %v1632_v0  ;;  %v1636_v53 = vpack.c.b16 %v1629_v40, %v1628_v52  ;;  %v1451_v57 = vpop.f32.mrf.mxu3 }
 0x2d5   :  { %2718 = vmatmul.msk.bf16.gmra.mxu3 %vm286_vm0, %v3149_v5 }
 0x2d6   :  { %v1228_v27 = vmax.f32 %v1150_v19, 0.0  ;;  %v1734_v19 = vpack.c.bf16 %v1443_v13, %v1441_v50  ;;  %v3354_v50 = vpop.f32.mrf.mxu2 }
 0x2d8   :  { %v1292_v5 = vpack.c.bf16 %v1228_v27, %v1228_v27 }
 0x2da   :  { %v1634_v7 = vunpack.c.l.b16 %v1292_v5 }
 0x2db   :  { %v1151_v14 = vpop.f32.mrf.mxu0 }
 0x2dc   :  { %v1152_v55 = vadd.f32 %v1151_v14, %v3147_v1  ;;  %v1453_v33 = vpop.f32.mrf.mxu3 }
 0x2de   :  { %v1229_v16 = vmax.f32 %v1152_v55, 0.0  ;;  %v3358_v8 = vpop.f32.mrf.mxu2 }
 0x2e0   :  { %v1293_v32 = vpack.c.bf16 %v1229_v16, %v1229_v16 }
 0x2e2   :  { %v1635_v21 = vunpack.c.l.b16 %v1293_v32 }
 0x2e3   :  { %v3338_v30 = vpop.f32.mrf.mxu0 }
 0x2e4   :  { %v1639_v20 = vpack.c.b16 %v1635_v21, %v1634_v7  ;;  %v1456_v4 = vpop.f32.mrf.mxu3  ;;  %v1155_v31 = vadd.f32 %v3338_v30, %v3147_v1 }
 0x2e5   :  { %2719 = vmatmul.msk.bf16.gmra.mxu3 %vm286_vm0, %v3163_v11  ;;  %v3344_v11 = vpop.f32.mrf.mxu1 }
 0x2e6   :  { %1648 = vmatpush.bf16.msra.mxu1 %v1639_v20  ;;  %v3367_v59 = vpop.f32.mrf.mxu2 }
 0x2ea   :  { %1649 = vmatpush.bf16.msra.mxu1 %v1638_v28 }
 0x2eb   :  { %v1156_v62 = vpop.f32.mrf.mxu0 }
 0x2ec   :  { %v1458_v26 = vpop.f32.mrf.mxu3  ;;  %v1157_v0 = vadd.f32 %v1156_v62, %v3147_v1  ;;  %v1230_v62 = vmax.f32 %v1155_v31, 0.0 }
 0x2ed   :  { %v3348_v27 = vpop.f32.mrf.mxu1  ;;  %v1737_v56 = vpack.c.bf16 %v1458_v26, %v1456_v4 }
 0x2ee   :  { %1650 = vmatpush.bf16.msra.mxu1 %v1637_v25 }
 0x2f2   :  { %1651 = vmatpush.bf16.msra.mxu1 %v1636_v53 }
 0x2f3   :  { %v1159_v12 = vpop.f32.mrf.mxu0 }
 0x2f4   :  { %v1160_v29 = vadd.f32 %v1159_v12, %v3147_v1 }
 0x2f5   :  { %1856 = vmatmul.bf16.vlgmr.msra.gmra.mxu3 %v1734_v19  ;;  %2720 = vmatmul.msk.bf16.vlgmr.msra.gmra.mxu1 %vm286_vm0, %v3167_v45  ;;  %v3350_v44 = vpop.f32.mrf.mxu1  ;;  %v1736_v45 = vpack.c.bf16 %v1453_v33, %v1451_v57  ;;  %v1231_v19 = vmax.f32 %v1157_v0, 0.0 }
 0x2f6   :  { %v1232_v40 = vmax.f32 %v1160_v29, 0.0 }
 0x2f8   :  { %v1296_v57 = vpack.c.bf16 %v1232_v40, %v1232_v40  ;;  %v1726_v40 = vpack.c.bf16 %v3322_v47, %v3314_v51 }
 0x2fb   :  { %v1161_v14 = vpop.f32.mrf.mxu0 }
 0x2fc   :  { %v1162_v21 = vadd.f32 %v1161_v14, %v3147_v1 }
 0x2fd   :  { %v3356_v16 = vpop.f32.mrf.mxu1 }
 0x2fe   :  { %v1233_v60 = vmax.f32 %v1162_v21, 0.0 }
 0x300   :  { %v1297_v12 = vpack.c.bf16 %v1233_v60, %v1233_v60 }
 0x302   :  { %v1684_v30 = vunpack.c.l.b16 %v1297_v12 }
 0x303   :  { %v1164_v55 = vpop.f32.mrf.mxu0 }
 0x304   :  { %v1165_v9 = vadd.f32 %v1164_v55, %v3147_v1  ;;  %v3375_v55 = vpop.f32.mrf.mxu2 }
 0x305   :  { %1861 = vmatmul.bf16.gmra.mxu3 %v1735_v3  ;;  %2721 = vmatmul.msk.bf16.gmra.mxu1 %vm286_vm0, %v3173_v58  ;;  %v1494_v58 = vpop.f32.mrf.mxu1 }
 0x306   :  { %v1234_v20 = vmax.f32 %v1165_v9, 0.0 }
 0x308   :  { %v1298_v25 = vpack.c.bf16 %v1234_v20, %v1234_v20 }
 0x30a   :  { %v1685_v3 = vunpack.c.l.b16 %v1298_v25 }
 0x30b   :  { %v1166_v5 = vpop.f32.mrf.mxu0 }
 0x30c   :  { %v1167_v22 = vadd.f32 %v1166_v5, %v3147_v1  ;;  %v1294_v5 = vpack.c.bf16 %v1230_v62, %v1230_v62 }
 0x30d   :  { %v1496_v53 = vpop.f32.mrf.mxu1 }
 0x30e   :  { %v1235_v13 = vmax.f32 %v1167_v22, 0.0  ;;  %v1681_v22 = vunpack.c.l.b16 %v1294_v5 }
 0x310   :  { %v1299_v23 = vpack.c.bf16 %v1235_v13, %v1235_v13 }
 0x312   :  { %v1686_v10 = vunpack.c.l.b16 %v1299_v23 }
 0x313   :  { %v1169_v2 = vpop.f32.mrf.mxu0 }
 0x314   :  { %v1170_v32 = vadd.f32 %v1169_v2, %v3147_v1  ;;  %v1691_v33 = vpack.c.b16 %v1686_v10, %v1685_v3  ;;  %v1727_v10 = vpack.c.bf16 %v3342_v35, %v3332_v24 }
 0x315   :  { %1866 = vmatmul.bf16.gmra.mxu3 %v1736_v45  ;;  %2722 = vmatmul.msk.bf16.gmra.mxu1 %vm286_vm0, %v3179_v42  ;;  %v1683_v45 = vunpack.c.l.b16 %v1296_v57 }
 0x316   :  { %v1236_v39 = vmax.f32 %v1170_v32, 0.0  ;;  %v1499_v32 = vpop.f32.mrf.mxu1 }
 0x317   :  { %v1690_v4 = vpack.c.b16 %v1684_v30, %v1683_v45  ;;  %v1728_v45 = vpack.c.bf16 %v3348_v27, %v3344_v11 }
 0x318   :  { %v1300_v42 = vpack.c.bf16 %v1236_v39, %v1236_v39  ;;  %v3377_v39 = vpop.f32.mrf.mxu2 }
 0x31a   :  { %v1687_v15 = vunpack.c.l.b16 %v1300_v42 }
 0x31b   :  { %v1171_v7 = vpop.f32.mrf.mxu0 }
 0x31c   :  { %v1172_v41 = vadd.f32 %v1171_v7, %v3147_v1  ;;  %v1295_v1 = vpack.c.bf16 %v1231_v19, %v1231_v19 }
 0x31e   :  { %v1237_v61 = vmax.f32 %v1172_v41, 0.0  ;;  %v1682_v2 = vunpack.c.l.b16 %v1295_v1  ;;  %v1501_v7 = vpop.f32.mrf.mxu1 }
 0x31f   :  { %v1739_v29 = vpack.c.bf16 %v1501_v7, %v1499_v32 }
 0x320   :  { %v1301_v28 = vpack.c.bf16 %v1237_v61, %v1237_v61  ;;  %v1689_v9 = vpack.c.b16 %v1682_v2, %v1681_v22  ;;  %v3385_v13 = vpop.f32.mrf.mxu2 }
 0x322   :  { %v1688_v52 = vunpack.c.l.b16 %v1301_v28 }
 0x324   :  { %v1692_v14 = vpack.c.b16 %v1688_v52, %v1687_v15  ;;  %v224_v52 = vld [vmem:[#allocation7 + $0x88] sm:$0x1] }
 0x325   :  { %1871 = vmatmul.bf16.gmra.mxu3 %v1737_v56  ;;  %2723 = vmatmul.msk.bf16.gmra.mxu1 %vm286_vm0, %v3191_v36  ;;  %v1738_v36 = vpack.c.bf16 %v1496_v53, %v1494_v58  ;;  %v1758_v53 = vunpack.c.l.bf16 %v224_v52 }
 0x326   :  { %1701 = vmatpush.bf16.msra.mxu2 %v1692_v14  ;;  %v1504_v58 = vpop.f32.mrf.mxu1 }
 0x327   :  { %v3429_v14 = vperm.slane %v1758_v53, 0 }
 0x32a   :  { %1702 = vmatpush.bf16.msra.mxu2 %v1691_v33 }
 0x32e   :  { %1703 = vmatpush.bf16.msra.mxu2 %v1690_v4 }
 0x332   :  { %1704 = vmatpush.bf16.msra.mxu2 %v1689_v9 }
 0x335   :  { %2724 = vmatmul.msk.bf16.vlgmr.msra.gmra.mxu2 %vm286_vm0, %v3204_v34  ;;  %1876 = vmatmul.bf16.gmra.mxu3 %v1738_v36  ;;  %v3394_v34 = vpop.f32.mrf.mxu2 }
 0x336   :  { %1808 = vmatpush.bf16.msrb.mxu2 %v3293_v17 }
 0x338   :  { %v3383_v21 = vpop.f32.mrf.mxu3 }
 0x33a   :  { %1809 = vmatpush.bf16.msrb.mxu2 %v3298_v37 }
 0x33e   :  { %1810 = vmatpush.bf16.msrb.mxu2 %v3301_v38  ;;  %v1506_v38 = vpop.f32.mrf.mxu1 }
 0x33f   :  { %v1740_v42 = vpack.c.bf16 %v1506_v38, %v1504_v58 }
 0x340   :  { %v3389_v41 = vpop.f32.mrf.mxu3 }
 0x341   :  { %v1746_v17 = vpack.c.bf16 %v3389_v41, %v3383_v21 }
 0x342   :  { %1811 = vmatpush.bf16.msrb.mxu2 %v3304_v48  ;;  %v3402_v48 = vpop.f32.mrf.mxu2 }
 0x345   :  { %2725 = vmatmul.msk.bf16.gmra.mxu2 %vm286_vm0, %v3212_v49  ;;  %1881 = vmatmul.bf16.gmra.mxu3 %v1739_v29  ;;  %v1729_v29 = vpack.c.bf16 %v3356_v16, %v3350_v44 }
 0x346   :  { %1812 = vmatpush.bf16.msrb.mxu2 %v3307_v43  ;;  %v1509_v61 = vpop.f32.mrf.mxu1 }
 0x348   :  { %v3399_v37 = vpop.f32.mrf.mxu3 }
 0x34a   :  { %1813 = vmatpush.bf16.msrb.mxu2 %v3312_v46  ;;  %v1547_v46 = vpop.f32.mrf.mxu2 }
 0x34e   :  { %1814 = vmatpush.bf16.msrb.mxu2 %v3317_v54  ;;  %v1511_v26 = vpop.f32.mrf.mxu1 }
 0x34f   :  { %v1741_v0 = vpack.c.bf16 %v1511_v26, %v1509_v61 }
 0x350   :  { %v3405_v20 = vpop.f32.mrf.mxu3 }
 0x351   :  { %v1747_v43 = vpack.c.bf16 %v3405_v20, %v3399_v37 }
 0x352   :  { %1815 = vmatpush.bf16.msrb.mxu2 %v3320_v63  ;;  %v1549_v60 = vpop.f32.mrf.mxu2 }
 0x353   :  { %v1742_v56 = vpack.c.bf16 %v1549_v60, %v1547_v46 }
 0x355   :  { %2726 = vmatmul.msk.bf16.gmra.mxu2 %vm286_vm0, %v3220_v6  ;;  %1886 = vmatmul.bf16.gmra.mxu3 %v1740_v42 }
 0x358   :  { %v3411_v49 = vpop.f32.mrf.mxu3 }
 0x35a   :  { %v1552_v28 = vpop.f32.mrf.mxu2 }
 0x360   :  { %v3413_v54 = vpop.f32.mrf.mxu3 }
 0x361   :  { %v1748_v63 = vpack.c.bf16 %v3413_v54, %v3411_v49 }
 0x362   :  { %v1554_v25 = vpop.f32.mrf.mxu2 }
 0x363   :  { %v1743_v12 = vpack.c.bf16 %v1554_v25, %v1552_v28 }
 0x365   :  { %2727 = vmatmul.msk.bf16.gmra.mxu2 %vm286_vm0, %v3234_v18  ;;  %1891 = vmatmul.bf16.gmra.mxu3 %v1741_v0  ;;  %v1730_v0 = vpack.c.bf16 %v3358_v8, %v3354_v50  ;;  %v1731_v50 = vpack.c.bf16 %v3375_v55, %v3367_v59  ;;  %v2879_v8 = vld [vmem:[#allocation7 + $0xc8] sm:$0xff]  ;;  %v2877_v59 = vld [vmem:[#allocation7 + $0xb8] sm:$0xff] }
 0x366   :  { %2123 = vmatpush.bf16.msrb.mxu1 %v2879_v8  ;;  %2888 = vmatpush.bf16.msra.mxu2 %v2879_v8 }
 0x368   :  { %v3419_v23 = vpop.f32.mrf.mxu3 }
 0x36a   :  { %v1557_v19 = vpop.f32.mrf.mxu2 }
 0x370   :  { %v3421_v6 = vpop.f32.mrf.mxu3 }
 0x371   :  { %v1749_v31 = vpack.c.bf16 %v3421_v6, %v3419_v23 }
 0x372   :  { %v1559_v57 = vpop.f32.mrf.mxu2 }
 0x373   :  { %v1744_v5 = vpack.c.bf16 %v1559_v57, %v1557_v19  ;;  %v1653_v57 = vpop.f32.mrf.mxu1 }
 0x375   :  { %1816 = vmatmul.bf16.vlgmr.msrb.gmra.mxu2 %v1726_v40  ;;  %1896 = vmatmul.bf16.gmra.mxu3 %v1742_v56 }
 0x378   :  { %v1857_v15 = vpop.f32.mrf.mxu3 }
 0x379   :  { %v1858_v62 = vadd.f32 %v1857_v15, %v3429_v14 }
 0x37a   :  { %v1562_v24 = vpop.f32.mrf.mxu2 }
 0x37b   :  { %v1993_v3 = vmax.f32 %v1858_v62, 0.0  ;;  %v2875_v62 = vld [vmem:[#allocation7 + $0xa8] sm:$0xff] }
 0x380   :  { %v1859_v18 = vpop.f32.mrf.mxu3 }
 0x381   :  { %v1860_v51 = vadd.f32 %v1859_v18, %v3429_v14  ;;  %v2878_v18 = vld [vmem:[#allocation7 + $0xc0] sm:$0xff] }
 0x382   :  { %v1564_v9 = vpop.f32.mrf.mxu2  ;;  %2124 = vmatpush.bf16.msrb.mxu1 %v2878_v18  ;;  %2889 = vmatpush.bf16.msra.mxu2 %v2878_v18 }
 0x383   :  { %v1994_v1 = vmax.f32 %v1860_v51, 0.0  ;;  %v1745_v58 = vpack.c.bf16 %v1564_v9, %v1562_v24  ;;  %v2872_v24 = vld [vmem:[#allocation7 + $0x90] sm:$0xff] }
 0x385   :  { %1821 = vmatmul.bf16.gmra.mxu2 %v1727_v10  ;;  %1901 = vmatmul.bf16.gmra.mxu3 %v1743_v12  ;;  %v3433_v30 = vpack.c.bf16 %v1994_v1, %v1993_v3  ;;  %v1732_v10 = vpack.c.bf16 %v3385_v13, %v3377_v39 }
 0x386   :  { %2125 = vmatpush.bf16.msrb.mxu1 %v2877_v59  ;;  %2890 = vmatpush.bf16.msra.mxu2 %v2877_v59 }
 0x388   :  { %v1862_v47 = vpop.f32.mrf.mxu3 }
 0x389   :  { %v1863_v35 = vadd.f32 %v1862_v47, %v3429_v14 }
 0x38b   :  { %v1995_v32 = vmax.f32 %v1863_v35, 0.0  ;;  %v1733_v35 = vpack.c.bf16 %v3402_v48, %v3394_v34 }
 0x390   :  { %v1864_v33 = vpop.f32.mrf.mxu3 }
 0x391   :  { %v1865_v2 = vadd.f32 %v1864_v33, %v3429_v14  ;;  %v2874_v33 = vld [vmem:[#allocation7 + $0xa0] sm:$0xff] }
 0x393   :  { %v1996_v22 = vmax.f32 %v1865_v2, 0.0 }
 0x395   :  { %1826 = vmatmul.bf16.gmra.mxu2 %v1728_v45  ;;  %1906 = vmatmul.bf16.gmra.mxu3 %v1744_v5  ;;  %v3439_v36 = vpack.c.bf16 %v1996_v22, %v1995_v32  ;;  %v2873_v5 = vld [vmem:[#allocation7 + $0x98] sm:$0xff] }
 0x398   :  { %v1867_v4 = vpop.f32.mrf.mxu3 }
 0x399   :  { %v1868_v11 = vadd.f32 %v1867_v4, %v3429_v14 }
 0x39b   :  { %v1997_v42 = vmax.f32 %v1868_v11, 0.0 }
 0x3a0   :  { %v1869_v7 = vpop.f32.mrf.mxu3 }
 0x3a1   :  { %v1870_v27 = vadd.f32 %v1869_v7, %v3429_v14 }
 0x3a3   :  { %v1998_v61 = vmax.f32 %v1870_v27, 0.0 }
 0x3a5   :  { %1831 = vmatmul.bf16.gmra.mxu2 %v1729_v29  ;;  %1911 = vmatmul.bf16.gmra.mxu3 %v1745_v58  ;;  %v3445_v46 = vpack.c.bf16 %v1998_v61, %v1997_v42 }
 0x3a8   :  { %v1872_v38 = vpop.f32.mrf.mxu3 }
 0x3a9   :  { %v1873_v44 = vadd.f32 %v1872_v38, %v3429_v14 }
 0x3ab   :  { %v1999_v56 = vmax.f32 %v1873_v44, 0.0 }
 0x3b0   :  { %v1874_v26 = vpop.f32.mrf.mxu3 }
 0x3b1   :  { %v1875_v16 = vadd.f32 %v1874_v26, %v3429_v14 }
 0x3b3   :  { %v2000_v40 = vmax.f32 %v1875_v16, 0.0 }
 0x3b5   :  { %1836 = vmatmul.bf16.gmra.mxu2 %v1730_v0  ;;  %1916 = vmatmul.bf16.gmra.mxu3 %v1746_v17  ;;  %v3456_v25 = vpack.c.bf16 %v2000_v40, %v1999_v56 }
 0x3b8   :  { %v3454_v60 = vpop.f32.mrf.mxu2  ;;  %v1877_v28 = vpop.f32.mrf.mxu3 }
 0x3b9   :  { %v1878_v21 = vadd.f32 %v1877_v28, %v3429_v14 }
 0x3bb   :  { %v2001_v19 = vmax.f32 %v1878_v21, 0.0 }
 0x3c0   :  { %v3458_v15 = vpop.f32.mrf.mxu2  ;;  %v1879_v52 = vpop.f32.mrf.mxu3 }
 0x3c1   :  { %v1880_v41 = vadd.f32 %v1879_v52, %v3429_v14 }
 0x3c3   :  { %v2002_v12 = vmax.f32 %v1880_v41, 0.0 }
 0x3c5   :  { %1841 = vmatmul.bf16.gmra.mxu2 %v1731_v50  ;;  %1921 = vmatmul.bf16.gmra.mxu3 %v1747_v43  ;;  %v3469_v55 = vpack.c.bf16 %v2002_v12, %v2001_v19  ;;  %v2876_v43 = vld [vmem:[#allocation7 + $0xb0] sm:$0xff] }
 0x3c6   :  { %2126 = vmatpush.bf16.msrb.mxu1 %v2876_v43  ;;  %2891 = vmatpush.bf16.msra.mxu2 %v2876_v43 }
 0x3c8   :  { %v3467_v17 = vpop.f32.mrf.mxu2  ;;  %v1882_v53 = vpop.f32.mrf.mxu3 }
 0x3c9   :  { %v1883_v51 = vadd.f32 %v1882_v53, %v3429_v14 }
 0x3ca   :  { %2127 = vmatpush.bf16.msrb.mxu1 %v2875_v62  ;;  %2892 = vmatpush.bf16.msra.mxu2 %v2875_v62 }
 0x3cb   :  { %v2003_v39 = vmax.f32 %v1883_v51, 0.0 }
 0x3ce   :  { %2128 = vmatpush.bf16.msrb.mxu1 %v2874_v33  ;;  %2893 = vmatpush.bf16.msra.mxu2 %v2874_v33 }
 0x3d0   :  { %v3471_v37 = vpop.f32.mrf.mxu2  ;;  %v1884_v20 = vpop.f32.mrf.mxu3 }
 0x3d1   :  { %v1885_v47 = vadd.f32 %v1884_v20, %v3429_v14 }
 0x3d2   :  { %2129 = vmatpush.bf16.msrb.mxu1 %v2873_v5  ;;  %2894 = vmatpush.bf16.msra.mxu2 %v2873_v5 }
 0x3d3   :  { %v2004_v13 = vmax.f32 %v1885_v47, 0.0 }
 0x3d5   :  { %1846 = vmatmul.bf16.gmra.mxu2 %v1732_v10  ;;  %1926 = vmatmul.bf16.gmra.mxu3 %v1748_v63  ;;  %v3482_v45 = vpack.c.bf16 %v2004_v13, %v2003_v39  ;;  %v1655_v63 = vpop.f32.mrf.mxu1 }
 0x3d6   :  { %2130 = vmatpush.bf16.msrb.mxu1 %v2872_v24  ;;  %2895 = vmatpush.bf16.msra.mxu2 %v2872_v24  ;;  %v1750_v11 = vpack.c.bf16 %v1655_v63, %v1653_v57 }
 0x3d8   :  { %v3480_v3 = vpop.f32.mrf.mxu2  ;;  %v1887_v1 = vpop.f32.mrf.mxu3 }
 0x3d9   :  { %v1888_v2 = vadd.f32 %v1887_v1, %v3429_v14 }
 0x3db   :  { %v2005_v9 = vmax.f32 %v1888_v2, 0.0 }
 0x3dd   :  { %v1658_v58 = vpop.f32.mrf.mxu1 }
 0x3e0   :  { %v3484_v49 = vpop.f32.mrf.mxu2  ;;  %v1889_v54 = vpop.f32.mrf.mxu3 }
 0x3e1   :  { %v1890_v4 = vadd.f32 %v1889_v54, %v3429_v14 }
 0x3e3   :  { %v2006_v7 = vmax.f32 %v1890_v4, 0.0 }
 0x3e5   :  { %1851 = vmatmul.bf16.gmra.mxu2 %v1733_v35  ;;  %1931 = vmatmul.bf16.gmra.mxu3 %v1749_v31  ;;  %v3495_v29 = vpack.c.bf16 %v2006_v7, %v2005_v9  ;;  %v1660_v27 = vpop.f32.mrf.mxu1 }
 0x3e6   :  { %v1751_v50 = vpack.c.bf16 %v1660_v27, %v1658_v58 }
 0x3e8   :  { %v3493_v32 = vpop.f32.mrf.mxu2  ;;  %v1892_v22 = vpop.f32.mrf.mxu3 }
 0x3e9   :  { %v1893_v23 = vadd.f32 %v1892_v22, %v3429_v14 }
 0x3eb   :  { %v2007_v42 = vmax.f32 %v1893_v23, 0.0 }
 0x3ed   :  { %v1663_v44 = vpop.f32.mrf.mxu1 }
 0x3f0   :  { %v3497_v34 = vpop.f32.mrf.mxu2  ;;  %v1894_v48 = vpop.f32.mrf.mxu3 }
 0x3f1   :  { %v1895_v6 = vadd.f32 %v1894_v48, %v3429_v14 }
 0x3f3   :  { %v2008_v61 = vmax.f32 %v1895_v6, 0.0 }
 0x3f5   :  { %1936 = vmatmul.bf16.gmra.mxu3 %v1750_v11  ;;  %v3503_v16 = vpack.c.bf16 %v2008_v61, %v2007_v42  ;;  %v1665_v20 = vpop.f32.mrf.mxu1 }
 0x3f6   :  { %v1752_v1 = vpack.c.bf16 %v1665_v20, %v1663_v44 }
 0x3f8   :  { %v1817_v31 = vpop.f32.mrf.mxu2  ;;  %v1897_v38 = vpop.f32.mrf.mxu3 }
 0x3f9   :  { %v1818_v26 = vadd.f32 %v1817_v31, %v3429_v14  ;;  %v1898_v0 = vadd.f32 %v1897_v38, %v3429_v14 }
 0x3fb   :  { %v1977_v8 = vmax.f32 %v1818_v26, 0.0  ;;  %v2009_v21 = vmax.f32 %v1898_v0, 0.0 }
 0x3fd   :  { %v1668_v54 = vpop.f32.mrf.mxu1 }
 0x400   :  { %v1819_v28 = vpop.f32.mrf.mxu2  ;;  %v1899_v56 = vpop.f32.mrf.mxu3 }
 0x401   :  { %v1820_v40 = vadd.f32 %v1819_v28, %v3429_v14  ;;  %v1900_v52 = vadd.f32 %v1899_v56, %v3429_v14 }
 0x403   :  { %v1978_v41 = vmax.f32 %v1820_v40, 0.0  ;;  %v2010_v53 = vmax.f32 %v1900_v52, 0.0 }
 0x405   :  { %v2041_v18 = vpack.c.bf16 %v1978_v41, %v1977_v8  ;;  %1941 = vmatmul.bf16.gmra.mxu3 %v1751_v50  ;;  %v3507_v19 = vpack.c.bf16 %v2010_v53, %v2009_v21  ;;  %v1670_v4 = vpop.f32.mrf.mxu1  ;;  %v1754_v8 = vpack.c.bf16 %v3458_v15, %v3454_v60  ;;  %v1755_v15 = vpack.c.bf16 %v3471_v37, %v3467_v17 }
 0x406   :  { %v1753_v27 = vpack.c.bf16 %v1670_v4, %v1668_v54  ;;  %v1756_v37 = vpack.c.bf16 %v3484_v49, %v3480_v3  ;;  %v1757_v49 = vpack.c.bf16 %v3497_v34, %v3493_v32 }
 0x407   :  { %2131 = vmatmul.bf16.vlgmr.msrb.gmra.mxu1 %v2041_v18 }
 0x408   :  { %v1822_v12 = vpop.f32.mrf.mxu2  ;;  %v1902_v59 = vpop.f32.mrf.mxu3 }
 0x409   :  { %v1823_v43 = vadd.f32 %v1822_v12, %v3429_v14  ;;  %v1903_v10 = vadd.f32 %v1902_v59, %v3429_v14 }
 0x40b   :  { %v1979_v33 = vmax.f32 %v1823_v43, 0.0  ;;  %v2011_v39 = vmax.f32 %v1903_v10, 0.0 }
 0x410   :  { %v1824_v62 = vpop.f32.mrf.mxu2  ;;  %v1904_v51 = vpop.f32.mrf.mxu3 }
 0x411   :  { %v1825_v47 = vadd.f32 %v1824_v62, %v3429_v14  ;;  %v1905_v57 = vadd.f32 %v1904_v51, %v3429_v14 }
 0x413   :  { %v1980_v13 = vmax.f32 %v1825_v47, 0.0  ;;  %v2012_v5 = vmax.f32 %v1905_v57, 0.0 }
 0x415   :  { %1946 = vmatmul.bf16.gmra.mxu3 %v1752_v1  ;;  %v2042_v63 = vpack.c.bf16 %v1980_v13, %v1979_v33  ;;  %v3513_v24 = vpack.c.bf16 %v2012_v5, %v2011_v39 }
 0x417   :  { %2136 = vmatmul.bf16.gmra.mxu1 %v2042_v63 }
 0x418   :  { %v1827_v35 = vpop.f32.mrf.mxu2  ;;  %v1907_v2 = vpop.f32.mrf.mxu3 }
 0x419   :  { %v1828_v22 = vadd.f32 %v1827_v35, %v3429_v14  ;;  %v1908_v9 = vadd.f32 %v1907_v2, %v3429_v14 }
 0x41b   :  { %v1981_v23 = vmax.f32 %v1828_v22, 0.0  ;;  %v2013_v6 = vmax.f32 %v1908_v9, 0.0 }
 0x420   :  { %v1829_v7 = vpop.f32.mrf.mxu2  ;;  %v1909_v58 = vpop.f32.mrf.mxu3 }
 0x421   :  { %v1830_v48 = vadd.f32 %v1829_v7, %v3429_v14  ;;  %v1910_v11 = vadd.f32 %v1909_v58, %v3429_v14 }
 0x423   :  { %v1982_v31 = vmax.f32 %v1830_v48, 0.0  ;;  %v2014_v38 = vmax.f32 %v1910_v11, 0.0 }
 0x425   :  { %1951 = vmatmul.bf16.gmra.mxu3 %v1753_v27  ;;  %v2043_v42 = vpack.c.bf16 %v1982_v31, %v1981_v23  ;;  %v3519_v61 = vpack.c.bf16 %v2014_v38, %v2013_v6 }
 0x427   :  { %2141 = vmatmul.bf16.gmra.mxu1 %v2043_v42 }
 0x428   :  { %v1832_v26 = vpop.f32.mrf.mxu2  ;;  %v1912_v0 = vpop.f32.mrf.mxu3 }
 0x429   :  { %v1833_v44 = vadd.f32 %v1832_v26, %v3429_v14  ;;  %v1913_v28 = vadd.f32 %v1912_v0, %v3429_v14 }
 0x42b   :  { %v1983_v21 = vmax.f32 %v1833_v44, 0.0  ;;  %v2015_v41 = vmax.f32 %v1913_v28, 0.0 }
 0x430   :  { %v1834_v56 = vpop.f32.mrf.mxu2  ;;  %v1914_v40 = vpop.f32.mrf.mxu3 }
 0x431   :  { %v1835_v52 = vadd.f32 %v1834_v56, %v3429_v14  ;;  %v1915_v50 = vadd.f32 %v1914_v40, %v3429_v14 }
 0x433   :  { %v1984_v53 = vmax.f32 %v1835_v52, 0.0  ;;  %v2016_v18 = vmax.f32 %v1915_v50, 0.0 }
 0x435   :  { %1956 = vmatmul.bf16.gmra.mxu3 %v1754_v8  ;;  %v2044_v12 = vpack.c.bf16 %v1984_v53, %v1983_v21  ;;  %v3527_v59 = vpack.c.bf16 %v2016_v18, %v2015_v41 }
 0x437   :  { %2146 = vmatmul.bf16.gmra.mxu1 %v2044_v12 }
 0x438   :  { %v1837_v20 = vpop.f32.mrf.mxu2  ;;  %v1917_v43 = vpop.f32.mrf.mxu3 }
 0x439   :  { %v1838_v10 = vadd.f32 %v1837_v20, %v3429_v14  ;;  %v1918_v62 = vadd.f32 %v1917_v43, %v3429_v14 }
 0x43b   :  { %v1985_v1 = vmax.f32 %v1838_v10, 0.0  ;;  %v2017_v33 = vmax.f32 %v1918_v62, 0.0 }
 0x440   :  { %v1839_v51 = vpop.f32.mrf.mxu2  ;;  %v1919_v47 = vpop.f32.mrf.mxu3 }
 0x441   :  { %v1840_v57 = vadd.f32 %v1839_v51, %v3429_v14  ;;  %v1920_v60 = vadd.f32 %v1919_v47, %v3429_v14 }
 0x443   :  { %v1986_v39 = vmax.f32 %v1840_v57, 0.0  ;;  %v2018_v13 = vmax.f32 %v1920_v60, 0.0 }
 0x445   :  { %v2061_v5 = vpack.c.bf16 %v2018_v13, %v2017_v33  ;;  %1961 = vmatmul.bf16.gmra.mxu3 %v1755_v15  ;;  %v2045_v54 = vpack.c.bf16 %v1986_v39, %v1985_v1  ;;  %v241_v1 = vld [vmem:[#allocation7 + $0xd0] sm:$0x1] }
 0x446   :  { %v2073_v39 = vunpack.c.l.bf16 %v241_v1 }
 0x447   :  { %2151 = vmatmul.bf16.gmra.mxu1 %v2045_v54  ;;  %2231 = vmatmul.bf16.vlgmr.msra.gmra.mxu2 %v2061_v5 }
 0x448   :  { %v1842_v63 = vpop.f32.mrf.mxu2  ;;  %v1922_v35 = vpop.f32.mrf.mxu3 }
 0x449   :  { %v1843_v2 = vadd.f32 %v1842_v63, %v3429_v14  ;;  %v1923_v4 = vadd.f32 %v1922_v35, %v3429_v14  ;;  %v3553_v63 = vperm.slane %v2073_v39, 0 }
 0x44b   :  { %v1987_v58 = vmax.f32 %v1843_v2, 0.0  ;;  %v2019_v48 = vmax.f32 %v1923_v4, 0.0 }
 0x450   :  { %v1844_v22 = vpop.f32.mrf.mxu2  ;;  %v1924_v9 = vpop.f32.mrf.mxu3 }
 0x451   :  { %v1845_v7 = vadd.f32 %v1844_v22, %v3429_v14  ;;  %v1925_v17 = vadd.f32 %v1924_v9, %v3429_v14 }
 0x453   :  { %v1988_v11 = vmax.f32 %v1845_v7, 0.0  ;;  %v2020_v27 = vmax.f32 %v1925_v17, 0.0 }
 0x455   :  { %v2062_v23 = vpack.c.bf16 %v2020_v27, %v2019_v48  ;;  %1966 = vmatmul.bf16.gmra.mxu3 %v1756_v37  ;;  %v2046_v6 = vpack.c.bf16 %v1988_v11, %v1987_v58 }
 0x457   :  { %2156 = vmatmul.bf16.gmra.mxu1 %v2046_v6  ;;  %2236 = vmatmul.bf16.gmra.mxu2 %v2062_v23 }
 0x458   :  { %v1847_v31 = vpop.f32.mrf.mxu2  ;;  %v1927_v38 = vpop.f32.mrf.mxu3 }
 0x459   :  { %v1848_v42 = vadd.f32 %v1847_v31, %v3429_v14  ;;  %v1928_v26 = vadd.f32 %v1927_v38, %v3429_v14 }
 0x45b   :  { %v1989_v56 = vmax.f32 %v1848_v42, 0.0  ;;  %v2021_v40 = vmax.f32 %v1928_v26, 0.0 }
 0x460   :  { %v1849_v0 = vpop.f32.mrf.mxu2  ;;  %v1929_v44 = vpop.f32.mrf.mxu3 }
 0x461   :  { %v1850_v28 = vadd.f32 %v1849_v0, %v3429_v14  ;;  %v1930_v3 = vadd.f32 %v1929_v44, %v3429_v14 }
 0x463   :  { %v1990_v52 = vmax.f32 %v1850_v28, 0.0  ;;  %v2022_v50 = vmax.f32 %v1930_v3, 0.0 }
 0x465   :  { %v2063_v8 = vpack.c.bf16 %v2022_v50, %v2021_v40  ;;  %1971 = vmatmul.bf16.gmra.mxu3 %v1757_v49  ;;  %v2047_v21 = vpack.c.bf16 %v1990_v52, %v1989_v56 }
 0x467   :  { %2161 = vmatmul.bf16.gmra.mxu1 %v2047_v21  ;;  %2241 = vmatmul.bf16.gmra.mxu2 %v2063_v8 }
 0x468   :  { %v1852_v41 = vpop.f32.mrf.mxu2  ;;  %v1932_v53 = vpop.f32.mrf.mxu3 }
 0x469   :  { %v1853_v18 = vadd.f32 %v1852_v41, %v3429_v14  ;;  %v1933_v12 = vadd.f32 %v1932_v53, %v3429_v14 }
 0x46b   :  { %v1991_v34 = vmax.f32 %v1853_v18, 0.0  ;;  %v2023_v62 = vmax.f32 %v1933_v12, 0.0 }
 0x470   :  { %v1854_v20 = vpop.f32.mrf.mxu2  ;;  %v1934_v43 = vpop.f32.mrf.mxu3 }
 0x471   :  { %v1855_v10 = vadd.f32 %v1854_v20, %v3429_v14  ;;  %v1935_v32 = vadd.f32 %v1934_v43, %v3429_v14 }
 0x473   :  { %v1992_v51 = vmax.f32 %v1855_v10, 0.0  ;;  %v2024_v47 = vmax.f32 %v1935_v32, 0.0 }
 0x475   :  { %v2064_v57 = vpack.c.bf16 %v2024_v47, %v2023_v62  ;;  %v2048_v60 = vpack.c.bf16 %v1992_v51, %v1991_v34 }
 0x477   :  { %2166 = vmatmul.bf16.gmra.mxu1 %v2048_v60  ;;  %2246 = vmatmul.bf16.gmra.mxu2 %v2064_v57 }
 0x478   :  { %v1937_v15 = vpop.f32.mrf.mxu3 }
 0x479   :  { %v1938_v33 = vadd.f32 %v1937_v15, %v3429_v14 }
 0x47b   :  { %v2025_v5 = vmax.f32 %v1938_v33, 0.0 }
 0x480   :  { %v1939_v13 = vpop.f32.mrf.mxu3 }
 0x481   :  { %v1940_v54 = vadd.f32 %v1939_v13, %v3429_v14 }
 0x483   :  { %v2026_v35 = vmax.f32 %v1940_v54, 0.0 }
 0x484   :  { %v2132_v2 = vpop.f32.mrf.mxu1 }
 0x485   :  { %v2065_v4 = vpack.c.bf16 %v2026_v35, %v2025_v5  ;;  %v2133_v22 = vadd.f32 %v2132_v2, %v3553_v63 }
 0x487   :  { %2292 = vst [vmem:[#allocation8] sm:$0xff] %v2133_v22  ;;  %2171 = vmatmul.bf16.gmra.mxu1 %v3433_v30  ;;  %2251 = vmatmul.bf16.gmra.mxu2 %v2065_v4 }
 0x488   :  { %v1942_v9 = vpop.f32.mrf.mxu3 }
 0x489   :  { %v1943_v17 = vadd.f32 %v1942_v9, %v3429_v14 }
 0x48b   :  { %v2027_v48 = vmax.f32 %v1943_v17, 0.0 }
 0x48c   :  { %v2134_v7 = vpop.f32.mrf.mxu1 }
 0x48d   :  { %v2135_v37 = vadd.f32 %v2134_v7, %v3553_v63 }
 0x48f   :  { %2293 = vst [vmem:[#allocation8 + $0x8] sm:$0xff] %v2135_v37 }
 0x490   :  { %v1944_v58 = vpop.f32.mrf.mxu3 }
 0x491   :  { %v1945_v11 = vadd.f32 %v1944_v58, %v3429_v14 }
 0x493   :  { %v2028_v27 = vmax.f32 %v1945_v11, 0.0 }
 0x494   :  { %v2137_v23 = vpop.f32.mrf.mxu1 }
 0x495   :  { %v2066_v6 = vpack.c.bf16 %v2028_v27, %v2027_v48  ;;  %v2138_v31 = vadd.f32 %v2137_v23, %v3553_v63 }
 0x497   :  { %2294 = vst [vmem:[#allocation8 + $0x10] sm:$0xff] %v2138_v31  ;;  %2176 = vmatmul.bf16.gmra.mxu1 %v3439_v36  ;;  %2256 = vmatmul.bf16.gmra.mxu2 %v2066_v6 }
 0x498   :  { %v1947_v30 = vpop.f32.mrf.mxu3 }
 0x499   :  { %v1948_v42 = vadd.f32 %v1947_v30, %v3429_v14 }
 0x49b   :  { %v2029_v44 = vmax.f32 %v1948_v42, 0.0 }
 0x49c   :  { %v2139_v38 = vpop.f32.mrf.mxu1 }
 0x49d   :  { %v2140_v26 = vadd.f32 %v2139_v38, %v3553_v63 }
 0x49f   :  { %2295 = vst [vmem:[#allocation8 + $0x18] sm:$0xff] %v2140_v26 }
 0x4a0   :  { %v1949_v0 = vpop.f32.mrf.mxu3 }
 0x4a1   :  { %v1950_v28 = vadd.f32 %v1949_v0, %v3429_v14 }
 0x4a3   :  { %v2030_v3 = vmax.f32 %v1950_v28, 0.0 }
 0x4a4   :  { %v2142_v49 = vpop.f32.mrf.mxu1 }
 0x4a5   :  { %v2067_v56 = vpack.c.bf16 %v2030_v3, %v2029_v44  ;;  %v2143_v40 = vadd.f32 %v2142_v49, %v3553_v63 }
 0x4a7   :  { %2296 = vst [vmem:[#allocation8 + $0x20] sm:$0xff] %v2143_v40  ;;  %2181 = vmatmul.bf16.gmra.mxu1 %v3445_v46  ;;  %2261 = vmatmul.bf16.gmra.mxu2 %v2067_v56 }
 0x4a8   :  { %v1952_v36 = vpop.f32.mrf.mxu3 }
 0x4a9   :  { %v1953_v50 = vadd.f32 %v1952_v36, %v3429_v14 }
 0x4ab   :  { %v2031_v41 = vmax.f32 %v1953_v50, 0.0 }
 0x4ac   :  { %v2144_v52 = vpop.f32.mrf.mxu1 }
 0x4ad   :  { %v2145_v8 = vadd.f32 %v2144_v52, %v3553_v63 }
 0x4af   :  { %2297 = vst [vmem:[#allocation8 + $0x28] sm:$0xff] %v2145_v8 }
 0x4b0   :  { %v1954_v21 = vpop.f32.mrf.mxu3 }
 0x4b1   :  { %v1955_v53 = vadd.f32 %v1954_v21, %v3429_v14 }
 0x4b3   :  { %v2032_v18 = vmax.f32 %v1955_v53, 0.0 }
 0x4b4   :  { %v2147_v12 = vpop.f32.mrf.mxu1 }
 0x4b5   :  { %v2068_v20 = vpack.c.bf16 %v2032_v18, %v2031_v41  ;;  %v2148_v43 = vadd.f32 %v2147_v12, %v3553_v63 }
 0x4b7   :  { %2298 = vst [vmem:[#allocation8 + $0x30] sm:$0xff] %v2148_v43  ;;  %2186 = vmatmul.bf16.gmra.mxu1 %v3456_v25  ;;  %2266 = vmatmul.bf16.gmra.mxu2 %v2068_v20 }
 0x4b8   :  { %v1957_v46 = vpop.f32.mrf.mxu3 }
 0x4b9   :  { %v1958_v34 = vadd.f32 %v1957_v46, %v3429_v14 }
 0x4bb   :  { %v2033_v47 = vmax.f32 %v1958_v34, 0.0 }
 0x4bc   :  { %v2149_v10 = vpop.f32.mrf.mxu1 }
 0x4bd   :  { %v2150_v32 = vadd.f32 %v2149_v10, %v3553_v63 }
 0x4bf   :  { %2299 = vst [vmem:[#allocation8 + $0x38] sm:$0xff] %v2150_v32 }
 0x4c0   :  { %v1959_v62 = vpop.f32.mrf.mxu3 }
 0x4c1   :  { %v1960_v51 = vadd.f32 %v1959_v62, %v3429_v14 }
 0x4c3   :  { %v2034_v57 = vmax.f32 %v1960_v51, 0.0 }
 0x4c4   :  { %v2152_v60 = vpop.f32.mrf.mxu1 }
 0x4c5   :  { %v2069_v15 = vpack.c.bf16 %v2034_v57, %v2033_v47  ;;  %v2153_v1 = vadd.f32 %v2152_v60, %v3553_v63 }
 0x4c7   :  { %2300 = vst [vmem:[#allocation8 + $0x40] sm:$0xff] %v2153_v1  ;;  %2191 = vmatmul.bf16.gmra.mxu1 %v3469_v55  ;;  %2271 = vmatmul.bf16.gmra.mxu2 %v2069_v15 }
 0x4c8   :  { %v1962_v25 = vpop.f32.mrf.mxu3 }
 0x4c9   :  { %v1963_v54 = vadd.f32 %v1962_v25, %v3429_v14 }
 0x4ca   :  { %v2232_v33 = vpop.f32.mrf.mxu2 }
 0x4cb   :  { %v2233_v39 = vadd.f32 %v2232_v33, %v3553_v63  ;;  %v2035_v22 = vmax.f32 %v1963_v54, 0.0 }
 0x4cc   :  { %v2154_v13 = vpop.f32.mrf.mxu1 }
 0x4cd   :  { %2332 = vst [vmem:[#allocation8 + $0x140] sm:$0xff] %v2233_v39  ;;  %v2155_v5 = vadd.f32 %v2154_v13, %v3553_v63 }
 0x4cf   :  { %2301 = vst [vmem:[#allocation8 + $0x48] sm:$0xff] %v2155_v5 }
 0x4d0   :  { %v1964_v35 = vpop.f32.mrf.mxu3 }
 0x4d1   :  { %v1965_v2 = vadd.f32 %v1964_v35, %v3429_v14 }
 0x4d2   :  { %v2234_v4 = vpop.f32.mrf.mxu2 }
 0x4d3   :  { %v2036_v9 = vmax.f32 %v1965_v2, 0.0  ;;  %v2235_v55 = vadd.f32 %v2234_v4, %v3553_v63 }
 0x4d4   :  { %v2157_v7 = vpop.f32.mrf.mxu1 }
 0x4d5   :  { %v2070_v17 = vpack.c.bf16 %v2036_v9, %v2035_v22  ;;  %2333 = vst [vmem:[#allocation8 + $0x148] sm:$0xff] %v2235_v55  ;;  %v2158_v37 = vadd.f32 %v2157_v7, %v3553_v63 }
 0x4d7   :  { %2302 = vst [vmem:[#allocation8 + $0x50] sm:$0xff] %v2158_v37  ;;  %2196 = vmatmul.bf16.gmra.mxu1 %v3482_v45  ;;  %2276 = vmatmul.bf16.gmra.mxu2 %v2070_v17 }
 0x4d8   :  { %v1967_v58 = vpop.f32.mrf.mxu3 }
 0x4d9   :  { %v1968_v6 = vadd.f32 %v1967_v58, %v3429_v14 }
 0x4da   :  { %v2237_v48 = vpop.f32.mrf.mxu2 }
 0x4db   :  { %v2238_v11 = vadd.f32 %v2237_v48, %v3553_v63  ;;  %v2037_v42 = vmax.f32 %v1968_v6, 0.0 }
 0x4dc   :  { %v2159_v27 = vpop.f32.mrf.mxu1 }
 0x4dd   :  { %2334 = vst [vmem:[#allocation8 + $0x150] sm:$0xff] %v2238_v11  ;;  %v2160_v23 = vadd.f32 %v2159_v27, %v3553_v63 }
 0x4df   :  { %2303 = vst [vmem:[#allocation8 + $0x58] sm:$0xff] %v2160_v23 }
 0x4e0   :  { %v1969_v31 = vpop.f32.mrf.mxu3 }
 0x4e1   :  { %v1970_v30 = vadd.f32 %v1969_v31, %v3429_v14 }
 0x4e2   :  { %v2239_v38 = vpop.f32.mrf.mxu2 }
 0x4e3   :  { %v2038_v26 = vmax.f32 %v1970_v30, 0.0  ;;  %v2240_v45 = vadd.f32 %v2239_v38, %v3553_v63 }
 0x4e4   :  { %v2162_v0 = vpop.f32.mrf.mxu1 }
 0x4e5   :  { %v2071_v44 = vpack.c.bf16 %v2038_v26, %v2037_v42  ;;  %2335 = vst [vmem:[#allocation8 + $0x158] sm:$0xff] %v2240_v45  ;;  %v2163_v28 = vadd.f32 %v2162_v0, %v3553_v63 }
 0x4e7   :  { %2304 = vst [vmem:[#allocation8 + $0x60] sm:$0xff] %v2163_v28  ;;  %2201 = vmatmul.bf16.gmra.mxu1 %v3495_v29  ;;  %2281 = vmatmul.bf16.gmra.mxu2 %v2071_v44 }
 0x4e8   :  { %v1972_v3 = vpop.f32.mrf.mxu3 }
 0x4e9   :  { %v1973_v52 = vadd.f32 %v1972_v3, %v3429_v14 }
 0x4ea   :  { %v2242_v49 = vpop.f32.mrf.mxu2 }
 0x4eb   :  { %v2243_v56 = vadd.f32 %v2242_v49, %v3553_v63  ;;  %v2039_v41 = vmax.f32 %v1973_v52, 0.0 }
 0x4ec   :  { %v2164_v40 = vpop.f32.mrf.mxu1 }
 0x4ed   :  { %2336 = vst [vmem:[#allocation8 + $0x160] sm:$0xff] %v2243_v56  ;;  %v2165_v36 = vadd.f32 %v2164_v40, %v3553_v63 }
 0x4ef   :  { %2305 = vst [vmem:[#allocation8 + $0x68] sm:$0xff] %v2165_v36 }
 0x4f0   :  { %v1974_v50 = vpop.f32.mrf.mxu3 }
 0x4f1   :  { %v1975_v8 = vadd.f32 %v1974_v50, %v3429_v14 }
 0x4f2   :  { %v2244_v21 = vpop.f32.mrf.mxu2 }
 0x4f3   :  { %v2040_v53 = vmax.f32 %v1975_v8, 0.0  ;;  %v2245_v29 = vadd.f32 %v2244_v21, %v3553_v63 }
 0x4f4   :  { %v2167_v18 = vpop.f32.mrf.mxu1 }
 0x4f5   :  { %v2072_v12 = vpack.c.bf16 %v2040_v53, %v2039_v41  ;;  %2337 = vst [vmem:[#allocation8 + $0x168] sm:$0xff] %v2245_v29  ;;  %v2168_v20 = vadd.f32 %v2167_v18, %v3553_v63 }
 0x4f7   :  { %2306 = vst [vmem:[#allocation8 + $0x70] sm:$0xff] %v2168_v20  ;;  %2206 = vmatmul.bf16.gmra.mxu1 %v3503_v16  ;;  %2286 = vmatmul.bf16.gmra.mxu2 %v2072_v12 }
 0x4fa   :  { %v2247_v43 = vpop.f32.mrf.mxu2 }
 0x4fb   :  { %v2248_v46 = vadd.f32 %v2247_v43, %v3553_v63 }
 0x4fc   :  { %v2169_v10 = vpop.f32.mrf.mxu1 }
 0x4fd   :  { %2338 = vst [vmem:[#allocation8 + $0x170] sm:$0xff] %v2248_v46  ;;  %v2170_v14 = vadd.f32 %v2169_v10, %v3553_v63 }
 0x4ff   :  { %2307 = vst [vmem:[#allocation8 + $0x78] sm:$0xff] %v2170_v14 }
 0x502   :  { %v2249_v32 = vpop.f32.mrf.mxu2 }
 0x503   :  { %v2250_v34 = vadd.f32 %v2249_v32, %v3553_v63 }
 0x504   :  { %v2172_v62 = vpop.f32.mrf.mxu1 }
 0x505   :  { %2339 = vst [vmem:[#allocation8 + $0x178] sm:$0xff] %v2250_v34  ;;  %v2173_v51 = vadd.f32 %v2172_v62, %v3553_v63 }
 0x507   :  { %2308 = vst [vmem:[#allocation8 + $0x80] sm:$0xff] %v2173_v51  ;;  %2211 = vmatmul.bf16.gmra.mxu1 %v3507_v19 }
 0x50a   :  { %v2252_v16 = vpop.f32.mrf.mxu2 }
 0x50b   :  { %v2253_v47 = vadd.f32 %v2252_v16, %v3553_v63 }
 0x50c   :  { %v2174_v57 = vpop.f32.mrf.mxu1 }
 0x50d   :  { %2340 = vst [vmem:[#allocation8 + $0x180] sm:$0xff] %v2253_v47  ;;  %v2175_v60 = vadd.f32 %v2174_v57, %v3553_v63 }
 0x50f   :  { %2309 = vst [vmem:[#allocation8 + $0x88] sm:$0xff] %v2175_v60 }
 0x512   :  { %v2254_v15 = vpop.f32.mrf.mxu2 }
 0x513   :  { %v2255_v1 = vadd.f32 %v2254_v15, %v3553_v63 }
 0x514   :  { %v2177_v25 = vpop.f32.mrf.mxu1 }
 0x515   :  { %2341 = vst [vmem:[#allocation8 + $0x188] sm:$0xff] %v2255_v1  ;;  %v2178_v33 = vadd.f32 %v2177_v25, %v3553_v63 }
 0x517   :  { %2310 = vst [vmem:[#allocation8 + $0x90] sm:$0xff] %v2178_v33  ;;  %2216 = vmatmul.bf16.gmra.mxu1 %v3513_v24 }
 0x51a   :  { %v2257_v39 = vpop.f32.mrf.mxu2 }
 0x51b   :  { %v2258_v19 = vadd.f32 %v2257_v39, %v3553_v63 }
 0x51c   :  { %v2179_v13 = vpop.f32.mrf.mxu1 }
 0x51d   :  { %2342 = vst [vmem:[#allocation8 + $0x190] sm:$0xff] %v2258_v19  ;;  %v2180_v5 = vadd.f32 %v2179_v13, %v3553_v63 }
 0x51f   :  { %2311 = vst [vmem:[#allocation8 + $0x98] sm:$0xff] %v2180_v5 }
 0x522   :  { %v2259_v54 = vpop.f32.mrf.mxu2 }
 0x523   :  { %v2260_v35 = vadd.f32 %v2259_v54, %v3553_v63 }
 0x524   :  { %v2182_v2 = vpop.f32.mrf.mxu1 }
 0x525   :  { %2343 = vst [vmem:[#allocation8 + $0x198] sm:$0xff] %v2260_v35  ;;  %v2183_v4 = vadd.f32 %v2182_v2, %v3553_v63 }
 0x527   :  { %2312 = vst [vmem:[#allocation8 + $0xa0] sm:$0xff] %v2183_v4  ;;  %2221 = vmatmul.bf16.gmra.mxu1 %v3519_v61 }
 0x52a   :  { %v2262_v22 = vpop.f32.mrf.mxu2 }
 0x52b   :  { %v2263_v24 = vadd.f32 %v2262_v22, %v3553_v63 }
 0x52c   :  { %v2184_v9 = vpop.f32.mrf.mxu1 }
 0x52d   :  { %2344 = vst [vmem:[#allocation8 + $0x1a0] sm:$0xff] %v2263_v24  ;;  %v2185_v55 = vadd.f32 %v2184_v9, %v3553_v63 }
 0x52f   :  { %2313 = vst [vmem:[#allocation8 + $0xa8] sm:$0xff] %v2185_v55 }
 0x532   :  { %v2264_v7 = vpop.f32.mrf.mxu2 }
 0x533   :  { %v2265_v17 = vadd.f32 %v2264_v7, %v3553_v63 }
 0x534   :  { %v2187_v37 = vpop.f32.mrf.mxu1 }
 0x535   :  { %2345 = vst [vmem:[#allocation8 + $0x1a8] sm:$0xff] %v2265_v17  ;;  %v2188_v58 = vadd.f32 %v2187_v37, %v3553_v63 }
 0x537   :  { %2314 = vst [vmem:[#allocation8 + $0xb0] sm:$0xff] %v2188_v58  ;;  %2226 = vmatmul.bf16.gmra.mxu1 %v3527_v59 }
 0x53a   :  { %v2267_v48 = vpop.f32.mrf.mxu2 }
 0x53b   :  { %v2268_v61 = vadd.f32 %v2267_v48, %v3553_v63 }
 0x53c   :  { %v2189_v11 = vpop.f32.mrf.mxu1 }
 0x53d   :  { %2346 = vst [vmem:[#allocation8 + $0x1b0] sm:$0xff] %v2268_v61  ;;  %v2190_v27 = vadd.f32 %v2189_v11, %v3553_v63 }
 0x53f   :  { %2315 = vst [vmem:[#allocation8 + $0xb8] sm:$0xff] %v2190_v27 }
 0x542   :  { %v2269_v23 = vpop.f32.mrf.mxu2 }
 0x543   :  { %v2270_v6 = vadd.f32 %v2269_v23, %v3553_v63 }
 0x544   :  { %v2192_v31 = vpop.f32.mrf.mxu1 }
 0x545   :  { %2347 = vst [vmem:[#allocation8 + $0x1b8] sm:$0xff] %v2270_v6  ;;  %v2193_v30 = vadd.f32 %v2192_v31, %v3553_v63 }
 0x547   :  { %2316 = vst [vmem:[#allocation8 + $0xc0] sm:$0xff] %v2193_v30 }
 0x54a   :  { %v2272_v38 = vpop.f32.mrf.mxu2 }
 0x54b   :  { %v2273_v42 = vadd.f32 %v2272_v38, %v3553_v63 }
 0x54c   :  { %v2194_v59 = vpop.f32.mrf.mxu1 }
 0x54d   :  { %2348 = vst [vmem:[#allocation8 + $0x1c0] sm:$0xff] %v2273_v42  ;;  %v2195_v26 = vadd.f32 %v2194_v59, %v3553_v63 }
 0x54f   :  { %2317 = vst [vmem:[#allocation8 + $0xc8] sm:$0xff] %v2195_v26 }
 0x552   :  { %v2274_v45 = vpop.f32.mrf.mxu2 }
 0x553   :  { %v2275_v0 = vadd.f32 %v2274_v45, %v3553_v63 }
 0x554   :  { %v2197_v44 = vpop.f32.mrf.mxu1 }
 0x555   :  { %2349 = vst [vmem:[#allocation8 + $0x1c8] sm:$0xff] %v2275_v0  ;;  %v2198_v28 = vadd.f32 %v2197_v44, %v3553_v63 }
 0x557   :  { %2318 = vst [vmem:[#allocation8 + $0xd0] sm:$0xff] %v2198_v28 }
 0x55a   :  { %v2277_v3 = vpop.f32.mrf.mxu2 }
 0x55b   :  { %v2278_v49 = vadd.f32 %v2277_v3, %v3553_v63 }
 0x55c   :  { %v2199_v56 = vpop.f32.mrf.mxu1 }
 0x55d   :  { %2350 = vst [vmem:[#allocation8 + $0x1d0] sm:$0xff] %v2278_v49  ;;  %v2200_v40 = vadd.f32 %v2199_v56, %v3553_v63 }
 0x55f   :  { %2319 = vst [vmem:[#allocation8 + $0xd8] sm:$0xff] %v2200_v40 }
 0x562   :  { %v2279_v36 = vpop.f32.mrf.mxu2 }
 0x563   :  { %v2280_v52 = vadd.f32 %v2279_v36, %v3553_v63 }
 0x564   :  { %v2202_v50 = vpop.f32.mrf.mxu1 }
 0x565   :  { %2351 = vst [vmem:[#allocation8 + $0x1d8] sm:$0xff] %v2280_v52  ;;  %v2203_v8 = vadd.f32 %v2202_v50, %v3553_v63 }
 0x567   :  { %2320 = vst [vmem:[#allocation8 + $0xe0] sm:$0xff] %v2203_v8 }
 0x56a   :  { %v2282_v21 = vpop.f32.mrf.mxu2 }
 0x56b   :  { %v2283_v41 = vadd.f32 %v2282_v21, %v3553_v63 }
 0x56c   :  { %v2204_v53 = vpop.f32.mrf.mxu1 }
 0x56d   :  { %2352 = vst [vmem:[#allocation8 + $0x1e0] sm:$0xff] %v2283_v41  ;;  %v2205_v29 = vadd.f32 %v2204_v53, %v3553_v63 }
 0x56f   :  { %2321 = vst [vmem:[#allocation8 + $0xe8] sm:$0xff] %v2205_v29 }
 0x572   :  { %v2284_v18 = vpop.f32.mrf.mxu2 }
 0x573   :  { %v2285_v12 = vadd.f32 %v2284_v18, %v3553_v63 }
 0x574   :  { %v2207_v20 = vpop.f32.mrf.mxu1 }
 0x575   :  { %2353 = vst [vmem:[#allocation8 + $0x1e8] sm:$0xff] %v2285_v12  ;;  %v2208_v43 = vadd.f32 %v2207_v20, %v3553_v63 }
 0x577   :  { %2322 = vst [vmem:[#allocation8 + $0xf0] sm:$0xff] %v2208_v43 }
 0x57a   :  { %v2287_v46 = vpop.f32.mrf.mxu2 }
 0x57b   :  { %v2288_v10 = vadd.f32 %v2287_v46, %v3553_v63 }
 0x57c   :  { %v2209_v14 = vpop.f32.mrf.mxu1 }
 0x57d   :  { %2354 = vst [vmem:[#allocation8 + $0x1f0] sm:$0xff] %v2288_v10  ;;  %v2210_v32 = vadd.f32 %v2209_v14, %v3553_v63 }
 0x57f   :  { %2323 = vst [vmem:[#allocation8 + $0xf8] sm:$0xff] %v2210_v32 }
 0x582   :  { %v2289_v34 = vpop.f32.mrf.mxu2 }
 0x583   :  { %v2290_v62 = vadd.f32 %v2289_v34, %v3553_v63 }
 0x584   :  { %v2212_v51 = vpop.f32.mrf.mxu1 }
 0x585   :  { %2355 = vst [vmem:[#allocation8 + $0x1f8] sm:$0xff] %v2290_v62  ;;  %v2213_v16 = vadd.f32 %v2212_v51, %v3553_v63 }
 0x587   :  { %2324 = vst [vmem:[#allocation8 + $0x100] sm:$0xff] %v2213_v16 }
 0x58c   :  { %v2214_v47 = vpop.f32.mrf.mxu1 }
 0x58d   :  { %v2215_v57 = vadd.f32 %v2214_v47, %v3553_v63 }
 0x58f   :  { %2325 = vst [vmem:[#allocation8 + $0x108] sm:$0xff] %v2215_v57 }
 0x594   :  { %v2217_v60 = vpop.f32.mrf.mxu1 }
 0x595   :  { %v2218_v15 = vadd.f32 %v2217_v60, %v3553_v63 }
 0x597   :  { %2326 = vst [vmem:[#allocation8 + $0x110] sm:$0xff] %v2218_v15 }
 0x59c   :  { %v2219_v1 = vpop.f32.mrf.mxu1 }
 0x59d   :  { %v2220_v25 = vadd.f32 %v2219_v1, %v3553_v63 }
 0x59f   :  { %2327 = vst [vmem:[#allocation8 + $0x118] sm:$0xff] %v2220_v25 }
 0x5a4   :  { %v2222_v33 = vpop.f32.mrf.mxu1 }
 0x5a5   :  { %v2223_v39 = vadd.f32 %v2222_v33, %v3553_v63 }
 0x5a7   :  { %2328 = vst [vmem:[#allocation8 + $0x120] sm:$0xff] %v2223_v39 }
 0x5ac   :  { %v2224_v19 = vpop.f32.mrf.mxu1 }
 0x5ad   :  { %v2225_v13 = vadd.f32 %v2224_v19, %v3553_v63 }
 0x5af   :  { %2329 = vst [vmem:[#allocation8 + $0x128] sm:$0xff] %v2225_v13 }
 0x5b4   :  { %v2227_v5 = vpop.f32.mrf.mxu1 }
 0x5b5   :  { %v2228_v54 = vadd.f32 %v2227_v5, %v3553_v63 }
 0x5b7   :  { %2330 = vst [vmem:[#allocation8 + $0x130] sm:$0xff] %v2228_v54 }
 0x5bc   :  { %v2229_v35 = vpop.f32.mrf.mxu1 }
 0x5bd   :  { %v2230_v2 = vadd.f32 %v2229_v35, %v3553_v63 }
 0x5bf   :  { %2331 = vst [vmem:[#allocation8 + $0x138] sm:$0xff] %v2230_v2 }
 0x5c0   :  { %2368 = dma.vmem_to_hbm [thread:$0]  %s2361_s2, 8192, %s2363_s30, [#allocation4], %s3012_s4, %s3012_s4, %s3013_s5  }
 0x5c1   :  { %3004 = dma.done.wait [#allocation4], 8192  }
 0x5c2   :  { %3005 = vsyncadd [#allocation4], 4294959104 }
 0x5c3   :  { %2373 = vsyncpa [#allocation3], 1 }
 0x5c4   :  { %2374 = vsyncpa [#allocation6], 1 }
 0x5c5   :  { %2375 = vsyncpa [#allocation4], 1 }

</bundles_post_ra>
